<compile_context>
chip_gen: v7x
topology: tpu7x:2x2x1
jax: 0.10.0
libtpu: 0.0.40
codegen_flags: <defaults>
</compile_context>

<pallas_src>
import functools
import math

import jax
import jax.numpy as jnp
from jax.experimental import pallas as pl
from jax.experimental.pallas import tpu as pltpu


# ---------------------------------------------------------------------------
# Shared per-critic tail: bias+ReLU on h1, layers 2 & 3, VPU final layer.
# All math f32; only MXU operands are cast to bf16.
# ---------------------------------------------------------------------------
def _critic_tail(h1, w2, w3, b1, b2, b3, w4_row, b4):
    h = jnp.maximum(h1 + b1, 0.0)                                   # (B, H1)
    h = jnp.dot(h.astype(jnp.bfloat16), w2,
                preferred_element_type=jnp.float32)
    h = jnp.maximum(h + b2, 0.0)                                    # (B, H2)
    h = jnp.dot(h.astype(jnp.bfloat16), w3,
                preferred_element_type=jnp.float32)
    h = jnp.maximum(h + b3, 0.0)                                    # (B, H3)
    # Final layer has N=1: VPU multiply + lane reduce instead of an MXU pass.
    q = jnp.sum(h * w4_row, axis=-1, keepdims=True) + b4            # (B, 1)
    return q


# ---------------------------------------------------------------------------
# Fused kernel (single grid step, both critics): v5e / v6e path.
# ---------------------------------------------------------------------------
def _critic2_fused_kernel(s_ref, g_ref, a_ref,
                          w1s_ref, w1g_ref, w1a_ref,
                          w2_ref, w3_ref, slab_ref, q_ref,
                          *, H1, H2, H3):
    s = s_ref[...].astype(jnp.bfloat16)                             # (B, Ds)
    g = g_ref[...].astype(jnp.bfloat16)                             # (B, Dg)
    a = a_ref[...].astype(jnp.bfloat16)                             # (B, Da)

    # Joint layer 1 for BOTH critics: weights packed along the output dim
    # (D*, 2*H1), so one wide matmul chain covers critic 0 and critic 1.
    h1_both = (jnp.dot(s, w1s_ref[...], preferred_element_type=jnp.float32)
               + jnp.dot(g, w1g_ref[...], preferred_element_type=jnp.float32)
               + jnp.dot(a, w1a_ref[...], preferred_element_type=jnp.float32))

    qs = []
    for c in range(2):                                              # unrolled
        h1 = h1_both[:, c * H1:(c + 1) * H1]                        # (B, H1)
        b1 = slab_ref[c, 0:1, 0:H1]                                 # (1, H1)
        b2 = slab_ref[c, 1:2, 0:H2]                                 # (1, H2)
        b3 = slab_ref[c, 1:2, H2:H2 + H3]                           # (1, H3)
        w4 = slab_ref[c, 1:2, H2 + H3:H2 + 2 * H3]                  # (1, H3)
        b4 = slab_ref[c, 2:3, 0:1]                                  # (1, 1)
        qs.append(_critic_tail(h1, w2_ref[c], w3_ref[c], b1, b2, b3, w4, b4))

    # Single lane-dense (B, 2) output block; select-by-lane avoids sub-lane
    # partial stores.
    col = jax.lax.broadcasted_iota(jnp.int32, q_ref.shape, dimension=1)
    q_ref[...] = jnp.where(col == 0, qs[0], qs[1]).astype(q_ref.dtype)


# ---------------------------------------------------------------------------
# Per-critic kernel (grid=(2,), "parallel"): v7x path — one critic per core.
# ---------------------------------------------------------------------------
def _critic2_grid_kernel(s_ref, g_ref, a_ref,
                         w1s_ref, w1g_ref, w1a_ref,
                         w2_ref, w3_ref, slab_ref, q_ref,
                         *, H1, H2, H3):
    s = s_ref[...].astype(jnp.bfloat16)
    g = g_ref[...].astype(jnp.bfloat16)
    a = a_ref[...].astype(jnp.bfloat16)

    h1 = (jnp.dot(s, w1s_ref[...], preferred_element_type=jnp.float32)
          + jnp.dot(g, w1g_ref[...], preferred_element_type=jnp.float32)
          + jnp.dot(a, w1a_ref[...], preferred_element_type=jnp.float32))

    b1 = slab_ref[0:1, 0:H1]
    b2 = slab_ref[1:2, 0:H2]
    b3 = slab_ref[1:2, H2:H2 + H3]
    w4 = slab_ref[1:2, H2 + H3:H2 + 2 * H3]
    b4 = slab_ref[2:3, 0:1]

    q = _critic_tail(h1, w2_ref[...], w3_ref[...], b1, b2, b3, w4, b4)
    q_ref[...] = q.astype(q_ref.dtype)


# ---------------------------------------------------------------------------
# Wrapper
# ---------------------------------------------------------------------------
def critic2net_forward(state, subgoal, action, params, parallel_critics=False):
    """Runs both critics; returns (q1, q2), each (B, 1).

    params (see init_params):
      w1s (Ds, 2*H1) bf16, w1g (Dg, 2*H1) bf16, w1a (Da, 2*H1) bf16
          (layer-1 weight split into state/subgoal/action row blocks, both
           critics packed along the output dim)
      w2  (2, H1, H2) bf16,  w3 (2, H2, H3) bf16
      slab (2, 3, SLAB_W) f32:
          row 0: b1 ; row 1: [b2 | b3 | w4_row] ; row 2: [b4 | 0...]

    parallel_critics=True keeps a 2-wide "parallel" grid (one critic per
    TensorCore — use on v7x); False fuses both critics into one body
    (best on single-TC v5e / v6e).

    Throughput note: at small B the kernel is weight-DMA / launch bound;
    batching many transitions per call (B toward 128/256) is the main lever.
    """
    state = state.astype(jnp.float32)
    subgoal = subgoal.astype(jnp.float32)
    action = action.astype(jnp.float32)

    B = state.shape[0]
    Ds, Dg, Da = state.shape[1], subgoal.shape[1], action.shape[1]
    H1, H2 = params["w2"].shape[1], params["w2"].shape[2]
    H3 = params["w3"].shape[2]
    slab_w = params["slab"].shape[2]

    args = (state, subgoal, action,
            params["w1s"], params["w1g"], params["w1a"],
            params["w2"], params["w3"], params["slab"])

    if parallel_critics:
        kernel = functools.partial(_critic2_grid_kernel, H1=H1, H2=H2, H3=H3)
        grid_spec = pltpu.PrefetchScalarGridSpec(
            num_scalar_prefetch=0,
            grid=(2,),                                   # one step per critic
            in_specs=[
                pl.BlockSpec((B, Ds), lambda c: (0, 0)),
                pl.BlockSpec((B, Dg), lambda c: (0, 0)),
                pl.BlockSpec((B, Da), lambda c: (0, 0)),
                pl.BlockSpec((Ds, H1), lambda c: (0, c)),
                pl.BlockSpec((Dg, H1), lambda c: (0, c)),
                pl.BlockSpec((Da, H1), lambda c: (0, c)),
                pl.BlockSpec((None, H1, H2), lambda c: (c, 0, 0)),
                pl.BlockSpec((None, H2, H3), lambda c: (c, 0, 0)),
                pl.BlockSpec((None, 3, slab_w), lambda c: (c, 0, 0)),
            ],
            out_specs=pl.BlockSpec((None, B, 1), lambda c: (c, 0, 0)),
        )
        q = pl.pallas_call(
            kernel,
            out_shape=jax.ShapeDtypeStruct((2, B, 1), jnp.float32),
            grid_spec=grid_spec,
            compiler_params=pltpu.CompilerParams(
                dimension_semantics=("parallel",)),
        )(*args)
        return q[0], q[1]

    # Fused single-body variant (single-TC chips).
    kernel = functools.partial(_critic2_fused_kernel, H1=H1, H2=H2, H3=H3)
    grid_spec = pltpu.PrefetchScalarGridSpec(
        num_scalar_prefetch=0,
        grid=(1,),
        in_specs=[
            pl.BlockSpec((B, Ds), lambda i: (0, 0)),
            pl.BlockSpec((B, Dg), lambda i: (0, 0)),
            pl.BlockSpec((B, Da), lambda i: (0, 0)),
            pl.BlockSpec((Ds, 2 * H1), lambda i: (0, 0)),
            pl.BlockSpec((Dg, 2 * H1), lambda i: (0, 0)),
            pl.BlockSpec((Da, 2 * H1), lambda i: (0, 0)),
            pl.BlockSpec((2, H1, H2), lambda i: (0, 0, 0)),
            pl.BlockSpec((2, H2, H3), lambda i: (0, 0, 0)),
            pl.BlockSpec((2, 3, slab_w), lambda i: (0, 0, 0)),
        ],
        out_specs=pl.BlockSpec((B, 2), lambda i: (0, 0)),
    )
    q = pl.pallas_call(
        kernel,
        out_shape=jax.ShapeDtypeStruct((B, 2), jnp.float32),
        grid_spec=grid_spec,
        compiler_params=pltpu.CompilerParams(
            dimension_semantics=("arbitrary",)),
    )(*args)
    return q[:, 0:1], q[:, 1:2]


def _chip_has_multiple_tensorcores():
    """True on chips with >1 TensorCore (v7x); defensive fallback: False."""
    try:
        kind = (getattr(jax.devices()[0], "device_kind", "") or "").lower()
        return ("v7" in kind) or ("7x" in kind)
    except Exception:
        return False


def critic2net_forward_auto(state, subgoal, action, params):
    return critic2net_forward(state, subgoal, action, params,
                              parallel_critics=_chip_has_multiple_tensorcores())


# ---------------------------------------------------------------------------
# Deterministic parameter init (PyTorch nn.Linear style: U(-k,k), k=1/sqrt(fan_in)).
# Weights stored bf16 (MXU operand dtype); biases / w4 row / b4 in one f32 slab.
# ---------------------------------------------------------------------------
def init_params(key, state_dim, subgoal_dim, action_dim, mlp_dims=(512, 256, 128)):
    H1, H2, H3 = mlp_dims
    d_in = state_dim + subgoal_dim + action_dim
    dims = (d_in, H1, H2, H3, 1)

    Ws = [[None, None] for _ in range(4)]
    Bs = [[None, None] for _ in range(4)]
    for c in range(2):
        for li in range(4):
            fan_in, fan_out = dims[li], dims[li + 1]
            k = 1.0 / math.sqrt(fan_in)
            key, kw, kb = jax.random.split(key, 3)
            Ws[li][c] = jax.random.uniform(kw, (fan_in, fan_out), jnp.float32, -k, k)
            Bs[li][c] = jax.random.uniform(kb, (fan_out,), jnp.float32, -k, k)

    # Layer 1: both critics packed along output dim, then split into
    # state / subgoal / action row blocks (no concat needed at call time).
    w1_both = jnp.concatenate([Ws[0][0], Ws[0][1]], axis=1)        # (d_in, 2*H1)
    w1s = w1_both[:state_dim]
    w1g = w1_both[state_dim:state_dim + subgoal_dim]
    w1a = w1_both[state_dim + subgoal_dim:]

    # Consolidated f32 slab per critic: biases + final-layer row + final bias.
    slab_w = max(H1, H2 + 2 * H3)
    slab_w = ((slab_w + 127) // 128) * 128
    slab = jnp.zeros((2, 3, slab_w), jnp.float32)
    for c in range(2):
        slab = slab.at[c, 0, :H1].set(Bs[0][c])
        slab = slab.at[c, 1, :H2].set(Bs[1][c])
        slab = slab.at[c, 1, H2:H2 + H3].set(Bs[2][c])
        slab = slab.at[c, 1, H2 + H3:H2 + 2 * H3].set(Ws[3][c][:, 0])
        slab = slab.at[c, 2, 0].set(Bs[3][c][0])

    return {
        "w1s": w1s.astype(jnp.bfloat16),
        "w1g": w1g.astype(jnp.bfloat16),
        "w1a": w1a.astype(jnp.bfloat16),
        "w2": jnp.stack([Ws[1][0], Ws[1][1]]).astype(jnp.bfloat16),
        "w3": jnp.stack([Ws[2][0], Ws[2][1]]).astype(jnp.bfloat16),
        "slab": slab,
    }


# ---------------------------------------------------------------------------
# Pure-JAX reference.  Mirrors the kernel's bf16 operand rounding so the
# comparison isolates accumulation-order effects only.  (Note: bf16 MXU
# operands deviate ~1e-2 relative from a pure-f32 PyTorch Critic2net.)
# ---------------------------------------------------------------------------
def reference_forward(state, subgoal, action, params):
    H1, H2 = params["w2"].shape[1], params["w2"].shape[2]
    H3 = params["w3"].shape[2]
    x = jnp.concatenate([state, subgoal, action], axis=1).astype(jnp.float32)
    w1_both = jnp.concatenate(
        [params["w1s"], params["w1g"], params["w1a"]], axis=0).astype(jnp.float32)

    def r(a):  # bf16 operand rounding, as in the kernel
        return a.astype(jnp.bfloat16).astype(jnp.float32)

    outs = []
    for c in range(2):
        slab = params["slab"][c]
        w1 = w1_both[:, c * H1:(c + 1) * H1]
        h = jnp.maximum(r(x) @ w1 + slab[0, :H1], 0.0)
        h = jnp.maximum(r(h) @ params["w2"][c].astype(jnp.float32) + slab[1, :H2], 0.0)
        h = jnp.maximum(r(h) @ params["w3"][c].astype(jnp.float32)
                        + slab[1, H2:H2 + H3], 0.0)
        q = jnp.sum(h * slab[1, H2 + H3:H2 + 2 * H3], axis=-1, keepdims=True) + slab[2, 0]
        outs.append(q)
    return outs[0], outs[1]


if __name__ == "__main__":
    # Small shapes consistent with the module (pcd_encoder=None path).
    B = 8
    state_dim, subgoal_dim, action_dim = 16, 8, 8

    key = jax.random.PRNGKey(0)
    key, ks, kg, ka, kp = jax.random.split(key, 5)
    state = jax.random.normal(ks, (B, state_dim), jnp.float32)
    subgoal = jax.random.normal(kg, (B, subgoal_dim), jnp.float32)
    action = jax.random.normal(ka, (B, action_dim), jnp.float32)

    params = init_params(kp, state_dim, subgoal_dim, action_dim)
    r1, r2 = reference_forward(state, subgoal, action, params)

    # Exercise BOTH variants regardless of the chip (the 2-wide "parallel"
    # grid is legal on single-TC chips too; it just serializes).  The
    # auto-selected default for callers is critic2net_forward_auto.
    for parallel in (False, True):
        fwd = jax.jit(functools.partial(critic2net_forward,
                                        parallel_critics=parallel))
        q1, q2 = fwd(state, subgoal, action, params)
        jax.block_until_ready((q1, q2))
        assert q1.shape == (B, 1) and q2.shape == (B, 1)
        assert jnp.allclose(q1, r1, atol=2e-3, rtol=1e-3)
        assert jnp.allclose(q2, r2, atol=2e-3, rtol=1e-3)

    # TODO(synk): PointNetEncoder branch (pcd input) not implemented — the
    # reference module explicitly supports pcd_encoder=None, which is the
    # path reproduced here.
    print("KERNEL_OK")
</pallas_src>

<mosaic_0001>
module attributes {stable_mosaic.version = 11 : i64} {
  func.func @_critic2_fused_kernel(%arg0: i32, %arg1: memref<8x16xf32, #tpu.memory_space<vmem>>, %arg2: memref<8x8xf32, #tpu.memory_space<vmem>>, %arg3: memref<8x8xf32, #tpu.memory_space<vmem>>, %arg4: memref<16x1024xbf16, #tpu.memory_space<vmem>>, %arg5: memref<8x1024xbf16, #tpu.memory_space<vmem>>, %arg6: memref<8x1024xbf16, #tpu.memory_space<vmem>>, %arg7: memref<2x512x256xbf16, #tpu.memory_space<vmem>>, %arg8: memref<2x256x128xbf16, #tpu.memory_space<vmem>>, %arg9: memref<2x3x512xf32, #tpu.memory_space<vmem>>, %arg10: memref<8x2xf32, #tpu.memory_space<vmem>>) attributes {dimension_semantics = [#tpu.dimension_semantics<arbitrary>], iteration_bounds = array<i64: 1>, scalar_prefetch = 0 : i64, scratch_operands = 0 : i64, tpu.core_type = #tpu.core_type<tc>, window_params = [{pipeline_mode = #tpu.pipeline_mode<synchronous>, transform_indices = @transform_0, window_bounds = array<i64: 8, 16>}, {pipeline_mode = #tpu.pipeline_mode<synchronous>, transform_indices = @transform_1, window_bounds = array<i64: 8, 8>}, {pipeline_mode = #tpu.pipeline_mode<synchronous>, transform_indices = @transform_2, window_bounds = array<i64: 8, 8>}, {pipeline_mode = #tpu.pipeline_mode<synchronous>, transform_indices = @transform_3, window_bounds = array<i64: 16, 1024>}, {pipeline_mode = #tpu.pipeline_mode<synchronous>, transform_indices = @transform_4, window_bounds = array<i64: 8, 1024>}, {pipeline_mode = #tpu.pipeline_mode<synchronous>, transform_indices = @transform_5, window_bounds = array<i64: 8, 1024>}, {pipeline_mode = #tpu.pipeline_mode<synchronous>, transform_indices = @transform_6, window_bounds = array<i64: 2, 512, 256>}, {pipeline_mode = #tpu.pipeline_mode<synchronous>, transform_indices = @transform_7, window_bounds = array<i64: 2, 256, 128>}, {pipeline_mode = #tpu.pipeline_mode<synchronous>, transform_indices = @transform_8, window_bounds = array<i64: 2, 3, 512>}, {pipeline_mode = #tpu.pipeline_mode<synchronous>, transform_indices = @transform_9, window_bounds = array<i64: 8, 2>}]} {
    %c0 = arith.constant 0 : index
    %c0_0 = arith.constant 0 : index
    %0 = vector.load %arg1[%c0, %c0_0] : memref<8x16xf32, #tpu.memory_space<vmem>>, vector<8x16xf32>
    %1 = arith.truncf %0 : vector<8x16xf32> to vector<8x16xbf16>
    %c0_1 = arith.constant 0 : index
    %c0_2 = arith.constant 0 : index
    %2 = vector.load %arg2[%c0_1, %c0_2] : memref<8x8xf32, #tpu.memory_space<vmem>>, vector<8x8xf32>
    %3 = arith.truncf %2 : vector<8x8xf32> to vector<8x8xbf16>
    %c0_3 = arith.constant 0 : index
    %c0_4 = arith.constant 0 : index
    %4 = vector.load %arg3[%c0_3, %c0_4] : memref<8x8xf32, #tpu.memory_space<vmem>>, vector<8x8xf32>
    %5 = arith.truncf %4 : vector<8x8xf32> to vector<8x8xbf16>
    %c0_5 = arith.constant 0 : index
    %c0_6 = arith.constant 0 : index
    %6 = vector.load %arg4[%c0_5, %c0_6] : memref<16x1024xbf16, #tpu.memory_space<vmem>>, vector<16x1024xbf16>
    %cst = arith.constant dense<0.000000e+00> : vector<8x1024xf32>
    %7 = tpu.matmul %1, %6, %cst {dimension_numbers = #tpu.dot_dimension_numbers<[1], [0], [0], [1], [0, 0, 1, 1], [], []>} : vector<8x16xbf16>, vector<16x1024xbf16>, vector<8x1024xf32> -> vector<8x1024xf32>
    %c0_7 = arith.constant 0 : index
    %c0_8 = arith.constant 0 : index
    %8 = vector.load %arg5[%c0_7, %c0_8] : memref<8x1024xbf16, #tpu.memory_space<vmem>>, vector<8x1024xbf16>
    %cst_9 = arith.constant dense<0.000000e+00> : vector<8x1024xf32>
    %9 = tpu.matmul %3, %8, %cst_9 {dimension_numbers = #tpu.dot_dimension_numbers<[1], [0], [0], [1], [0, 0, 1, 1], [], []>} : vector<8x8xbf16>, vector<8x1024xbf16>, vector<8x1024xf32> -> vector<8x1024xf32>
    %10 = arith.addf %7, %9 : vector<8x1024xf32>
    %c0_10 = arith.constant 0 : index
    %c0_11 = arith.constant 0 : index
    %11 = vector.load %arg6[%c0_10, %c0_11] : memref<8x1024xbf16, #tpu.memory_space<vmem>>, vector<8x1024xbf16>
    %cst_12 = arith.constant dense<0.000000e+00> : vector<8x1024xf32>
    %12 = tpu.matmul %5, %11, %cst_12 {dimension_numbers = #tpu.dot_dimension_numbers<[1], [0], [0], [1], [0, 0, 1, 1], [], []>} : vector<8x8xbf16>, vector<8x1024xbf16>, vector<8x1024xf32> -> vector<8x1024xf32>
    %13 = arith.addf %10, %12 : vector<8x1024xf32>
    %14 = vector.extract_strided_slice %13 {offsets = [0, 0], sizes = [8, 512], strides = [1, 1]} : vector<8x1024xf32> to vector<8x512xf32>
    %c0_13 = arith.constant 0 : index
    %c0_14 = arith.constant 0 : index
    %c0_15 = arith.constant 0 : index
    %15 = vector.load %arg9[%c0_13, %c0_14, %c0_15] : memref<2x3x512xf32, #tpu.memory_space<vmem>>, vector<1x1x512xf32>
    %16 = vector.shape_cast %15 : vector<1x1x512xf32> to vector<1x512xf32>
    %c0_16 = arith.constant 0 : index
    %c1 = arith.constant 1 : index
    %c0_17 = arith.constant 0 : index
    %17 = vector.load %arg9[%c0_16, %c1, %c0_17] : memref<2x3x512xf32, #tpu.memory_space<vmem>>, vector<1x1x256xf32>
    %18 = vector.shape_cast %17 : vector<1x1x256xf32> to vector<1x256xf32>
    %c0_18 = arith.constant 0 : index
    %c1_19 = arith.constant 1 : index
    %c256 = arith.constant 256 : index
    %19 = vector.load %arg9[%c0_18, %c1_19, %c256] : memref<2x3x512xf32, #tpu.memory_space<vmem>>, vector<1x1x128xf32>
    %20 = vector.shape_cast %19 : vector<1x1x128xf32> to vector<1x128xf32>
    %c0_20 = arith.constant 0 : index
    %c1_21 = arith.constant 1 : index
    %c384 = arith.constant 384 : index
    %21 = vector.load %arg9[%c0_20, %c1_21, %c384] : memref<2x3x512xf32, #tpu.memory_space<vmem>>, vector<1x1x128xf32>
    %22 = vector.shape_cast %21 : vector<1x1x128xf32> to vector<1x128xf32>
    %c0_22 = arith.constant 0 : index
    %c2 = arith.constant 2 : index
    %c0_23 = arith.constant 0 : index
    %23 = vector.load %arg9[%c0_22, %c2, %c0_23] : memref<2x3x512xf32, #tpu.memory_space<vmem>>, vector<1x1x1xf32>
    %24 = vector.shape_cast %23 : vector<1x1x1xf32> to vector<1x1xf32>
    %c0_24 = arith.constant 0 : index
    %c0_25 = arith.constant 0 : index
    %c0_26 = arith.constant 0 : index
    %25 = vector.load %arg7[%c0_24, %c0_25, %c0_26] : memref<2x512x256xbf16, #tpu.memory_space<vmem>>, vector<1x512x256xbf16>
    %26 = vector.shape_cast %25 : vector<1x512x256xbf16> to vector<512x256xbf16>
    %c0_27 = arith.constant 0 : index
    %c0_28 = arith.constant 0 : index
    %c0_29 = arith.constant 0 : index
    %27 = vector.load %arg8[%c0_27, %c0_28, %c0_29] : memref<2x256x128xbf16, #tpu.memory_space<vmem>>, vector<1x256x128xbf16>
    %28 = vector.shape_cast %27 : vector<1x256x128xbf16> to vector<256x128xbf16>
    %29 = vector.broadcast %16 : vector<1x512xf32> to vector<8x512xf32>
    %30 = arith.addf %14, %29 : vector<8x512xf32>
    %cst_30 = arith.constant 0.000000e+00 : f32
    %31 = vector.broadcast %cst_30 : f32 to vector<8x512xf32>
    %32 = arith.maximumf %30, %31 : vector<8x512xf32>
    %33 = arith.truncf %32 : vector<8x512xf32> to vector<8x512xbf16>
    %cst_31 = arith.constant dense<0.000000e+00> : vector<8x256xf32>
    %34 = tpu.matmul %33, %26, %cst_31 {dimension_numbers = #tpu.dot_dimension_numbers<[1], [0], [0], [1], [0, 0, 1, 1], [], []>} : vector<8x512xbf16>, vector<512x256xbf16>, vector<8x256xf32> -> vector<8x256xf32>
    %35 = vector.broadcast %18 : vector<1x256xf32> to vector<8x256xf32>
    %36 = arith.addf %34, %35 : vector<8x256xf32>
    %cst_32 = arith.constant 0.000000e+00 : f32
    %37 = vector.broadcast %cst_32 : f32 to vector<8x256xf32>
    %38 = arith.maximumf %36, %37 : vector<8x256xf32>
    %39 = arith.truncf %38 : vector<8x256xf32> to vector<8x256xbf16>
    %cst_33 = arith.constant dense<0.000000e+00> : vector<8x128xf32>
    %40 = tpu.matmul %39, %28, %cst_33 {dimension_numbers = #tpu.dot_dimension_numbers<[1], [0], [0], [1], [0, 0, 1, 1], [], []>} : vector<8x256xbf16>, vector<256x128xbf16>, vector<8x128xf32> -> vector<8x128xf32>
    %41 = vector.broadcast %20 : vector<1x128xf32> to vector<8x128xf32>
    %42 = arith.addf %40, %41 : vector<8x128xf32>
    %cst_34 = arith.constant 0.000000e+00 : f32
    %43 = vector.broadcast %cst_34 : f32 to vector<8x128xf32>
    %44 = arith.maximumf %42, %43 : vector<8x128xf32>
    %45 = vector.broadcast %22 : vector<1x128xf32> to vector<8x128xf32>
    %46 = arith.mulf %44, %45 : vector<8x128xf32>
    %cst_35 = arith.constant dense<0.000000e+00> : vector<8xf32>
    %47 = vector.multi_reduction <add>, %46, %cst_35 [1] : vector<8x128xf32> to vector<8xf32>
    %48 = vector.shape_cast %47 : vector<8xf32> to vector<8x1xf32>
    %49 = vector.broadcast %24 : vector<1x1xf32> to vector<8x1xf32>
    %50 = arith.addf %48, %49 : vector<8x1xf32>
    %51 = vector.extract_strided_slice %13 {offsets = [0, 512], sizes = [8, 512], strides = [1, 1]} : vector<8x1024xf32> to vector<8x512xf32>
    %c1_36 = arith.constant 1 : index
    %c0_37 = arith.constant 0 : index
    %c0_38 = arith.constant 0 : index
    %52 = vector.load %arg9[%c1_36, %c0_37, %c0_38] : memref<2x3x512xf32, #tpu.memory_space<vmem>>, vector<1x1x512xf32>
    %53 = vector.shape_cast %52 : vector<1x1x512xf32> to vector<1x512xf32>
    %c1_39 = arith.constant 1 : index
    %c1_40 = arith.constant 1 : index
    %c0_41 = arith.constant 0 : index
    %54 = vector.load %arg9[%c1_39, %c1_40, %c0_41] : memref<2x3x512xf32, #tpu.memory_space<vmem>>, vector<1x1x256xf32>
    %55 = vector.shape_cast %54 : vector<1x1x256xf32> to vector<1x256xf32>
    %c1_42 = arith.constant 1 : index
    %c1_43 = arith.constant 1 : index
    %c256_44 = arith.constant 256 : index
    %56 = vector.load %arg9[%c1_42, %c1_43, %c256_44] : memref<2x3x512xf32, #tpu.memory_space<vmem>>, vector<1x1x128xf32>
    %57 = vector.shape_cast %56 : vector<1x1x128xf32> to vector<1x128xf32>
    %c1_45 = arith.constant 1 : index
    %c1_46 = arith.constant 1 : index
    %c384_47 = arith.constant 384 : index
    %58 = vector.load %arg9[%c1_45, %c1_46, %c384_47] : memref<2x3x512xf32, #tpu.memory_space<vmem>>, vector<1x1x128xf32>
    %59 = vector.shape_cast %58 : vector<1x1x128xf32> to vector<1x128xf32>
    %c1_48 = arith.constant 1 : index
    %c2_49 = arith.constant 2 : index
    %c0_50 = arith.constant 0 : index
    %60 = vector.load %arg9[%c1_48, %c2_49, %c0_50] : memref<2x3x512xf32, #tpu.memory_space<vmem>>, vector<1x1x1xf32>
    %61 = vector.shape_cast %60 : vector<1x1x1xf32> to vector<1x1xf32>
    %c1_51 = arith.constant 1 : index
    %c0_52 = arith.constant 0 : index
    %c0_53 = arith.constant 0 : index
    %62 = vector.load %arg7[%c1_51, %c0_52, %c0_53] : memref<2x512x256xbf16, #tpu.memory_space<vmem>>, vector<1x512x256xbf16>
    %63 = vector.shape_cast %62 : vector<1x512x256xbf16> to vector<512x256xbf16>
    %c1_54 = arith.constant 1 : index
    %c0_55 = arith.constant 0 : index
    %c0_56 = arith.constant 0 : index
    %64 = vector.load %arg8[%c1_54, %c0_55, %c0_56] : memref<2x256x128xbf16, #tpu.memory_space<vmem>>, vector<1x256x128xbf16>
    %65 = vector.shape_cast %64 : vector<1x256x128xbf16> to vector<256x128xbf16>
    %66 = vector.broadcast %53 : vector<1x512xf32> to vector<8x512xf32>
    %67 = arith.addf %51, %66 : vector<8x512xf32>
    %cst_57 = arith.constant 0.000000e+00 : f32
    %68 = vector.broadcast %cst_57 : f32 to vector<8x512xf32>
    %69 = arith.maximumf %67, %68 : vector<8x512xf32>
    %70 = arith.truncf %69 : vector<8x512xf32> to vector<8x512xbf16>
    %cst_58 = arith.constant dense<0.000000e+00> : vector<8x256xf32>
    %71 = tpu.matmul %70, %63, %cst_58 {dimension_numbers = #tpu.dot_dimension_numbers<[1], [0], [0], [1], [0, 0, 1, 1], [], []>} : vector<8x512xbf16>, vector<512x256xbf16>, vector<8x256xf32> -> vector<8x256xf32>
    %72 = vector.broadcast %55 : vector<1x256xf32> to vector<8x256xf32>
    %73 = arith.addf %71, %72 : vector<8x256xf32>
    %cst_59 = arith.constant 0.000000e+00 : f32
    %74 = vector.broadcast %cst_59 : f32 to vector<8x256xf32>
    %75 = arith.maximumf %73, %74 : vector<8x256xf32>
    %76 = arith.truncf %75 : vector<8x256xf32> to vector<8x256xbf16>
    %cst_60 = arith.constant dense<0.000000e+00> : vector<8x128xf32>
    %77 = tpu.matmul %76, %65, %cst_60 {dimension_numbers = #tpu.dot_dimension_numbers<[1], [0], [0], [1], [0, 0, 1, 1], [], []>} : vector<8x256xbf16>, vector<256x128xbf16>, vector<8x128xf32> -> vector<8x128xf32>
    %78 = vector.broadcast %57 : vector<1x128xf32> to vector<8x128xf32>
    %79 = arith.addf %77, %78 : vector<8x128xf32>
    %cst_61 = arith.constant 0.000000e+00 : f32
    %80 = vector.broadcast %cst_61 : f32 to vector<8x128xf32>
    %81 = arith.maximumf %79, %80 : vector<8x128xf32>
    %82 = vector.broadcast %59 : vector<1x128xf32> to vector<8x128xf32>
    %83 = arith.mulf %81, %82 : vector<8x128xf32>
    %cst_62 = arith.constant dense<0.000000e+00> : vector<8xf32>
    %84 = vector.multi_reduction <add>, %83, %cst_62 [1] : vector<8x128xf32> to vector<8xf32>
    %85 = vector.shape_cast %84 : vector<8xf32> to vector<8x1xf32>
    %86 = vector.broadcast %61 : vector<1x1xf32> to vector<8x1xf32>
    %87 = arith.addf %85, %86 : vector<8x1xf32>
    %88 = tpu.iota {dimensions = array<i32: 1>} : vector<8x2xi32>
    %c0_i32 = arith.constant 0 : i32
    %89 = vector.broadcast %c0_i32 : i32 to vector<8x2xi32>
    %90 = arith.cmpi eq, %88, %89 : vector<8x2xi32>
    %91 = vector.shape_cast %50 : vector<8x1xf32> to vector<8x1xf32>
    %92 = vector.broadcast %91 : vector<8x1xf32> to vector<8x2xf32>
    %93 = vector.shape_cast %87 : vector<8x1xf32> to vector<8x1xf32>
    %94 = vector.broadcast %93 : vector<8x1xf32> to vector<8x2xf32>
    %95 = arith.select %90, %92, %94 : vector<8x2xi1>, vector<8x2xf32>
    %c0_63 = arith.constant 0 : index
    %c0_64 = arith.constant 0 : index
    %96 = vector.load %arg10[%c0_63, %c0_64] : memref<8x2xf32, #tpu.memory_space<vmem>>, vector<8x2xf32>
    tpu.vector_store %arg10[%c0_63, %c0_64], %95 {strides = array<i32>} : memref<8x2xf32, #tpu.memory_space<vmem>>, vector<8x2xf32>,
    return
  }
  func.func @transform_0(%arg0: i32) -> (i32, i32) {
    %c0_i32 = arith.constant 0 : i32
    %c0_i32_0 = arith.constant 0 : i32
    %c0_i32_1 = arith.constant 0 : i32
    return %c0_i32, %c0_i32_0 : i32, i32
  }
  func.func @transform_1(%arg0: i32) -> (i32, i32) {
    %c0_i32 = arith.constant 0 : i32
    %c0_i32_0 = arith.constant 0 : i32
    %c0_i32_1 = arith.constant 0 : i32
    return %c0_i32, %c0_i32_0 : i32, i32
  }
  func.func @transform_2(%arg0: i32) -> (i32, i32) {
    %c0_i32 = arith.constant 0 : i32
    %c0_i32_0 = arith.constant 0 : i32
    %c0_i32_1 = arith.constant 0 : i32
    return %c0_i32, %c0_i32_0 : i32, i32
  }
  func.func @transform_3(%arg0: i32) -> (i32, i32) {
    %c0_i32 = arith.constant 0 : i32
    %c0_i32_0 = arith.constant 0 : i32
    %c0_i32_1 = arith.constant 0 : i32
    return %c0_i32, %c0_i32_0 : i32, i32
  }
  func.func @transform_4(%arg0: i32) -> (i32, i32) {
    %c0_i32 = arith.constant 0 : i32
    %c0_i32_0 = arith.constant 0 : i32
    %c0_i32_1 = arith.constant 0 : i32
    return %c0_i32, %c0_i32_0 : i32, i32
  }
  func.func @transform_5(%arg0: i32) -> (i32, i32) {
    %c0_i32 = arith.constant 0 : i32
    %c0_i32_0 = arith.constant 0 : i32
    %c0_i32_1 = arith.constant 0 : i32
    return %c0_i32, %c0_i32_0 : i32, i32
  }
  func.func @transform_6(%arg0: i32) -> (i32, i32, i32) {
    %c0_i32 = arith.constant 0 : i32
    %c0_i32_0 = arith.constant 0 : i32
    %c0_i32_1 = arith.constant 0 : i32
    %c0_i32_2 = arith.constant 0 : i32
    return %c0_i32, %c0_i32_0, %c0_i32_1 : i32, i32, i32
  }
  func.func @transform_7(%arg0: i32) -> (i32, i32, i32) {
    %c0_i32 = arith.constant 0 : i32
    %c0_i32_0 = arith.constant 0 : i32
    %c0_i32_1 = arith.constant 0 : i32
    %c0_i32_2 = arith.constant 0 : i32
    return %c0_i32, %c0_i32_0, %c0_i32_1 : i32, i32, i32
  }
  func.func @transform_8(%arg0: i32) -> (i32, i32, i32) {
    %c0_i32 = arith.constant 0 : i32
    %c0_i32_0 = arith.constant 0 : i32
    %c0_i32_1 = arith.constant 0 : i32
    %c0_i32_2 = arith.constant 0 : i32
    return %c0_i32, %c0_i32_0, %c0_i32_1 : i32, i32, i32
  }
  func.func @transform_9(%arg0: i32) -> (i32, i32) {
    %c0_i32 = arith.constant 0 : i32
    %c0_i32_0 = arith.constant 0 : i32
    %c0_i32_1 = arith.constant 0 : i32
    return %c0_i32, %c0_i32_0 : i32, i32
  }
}

</mosaic_0001>

<bundles_post_ra>
// kernel: critic2net_forward.1
= control target key start
LH: loop header
LB: loop body
LE: loop exit
PB: predicated region body
PF: predicated region fallthrough
CT: control target
= control target key end

     0   :  { %14 = vsyncpa [#allocation3], 0  ;;  %s3167_s0 = inlined_call_operand.vmem [shape: f32[8,16], index: 0, kind: input, shape index: {}]   ;;  %s3168_s1 = inlined_call_operand.hbm [shape: f32[8,8], index: 1, kind: input, shape index: {}]   ;;  %s3169_s2 = inlined_call_operand.hbm [shape: f32[8,8], index: 2, kind: input, shape index: {}]   ;;  %s3170_s3 = inlined_call_operand.vmem [shape: bf16[16,1024], index: 3, kind: input, shape index: {}]   ;;  %s3171_s4 = inlined_call_operand.hbm [shape: bf16[8,1024], index: 4, kind: input, shape index: {}]   ;;  %s3172_s5 = inlined_call_operand.hbm [shape: bf16[8,1024], index: 5, kind: input, shape index: {}]   ;;  %s3173_s6 = inlined_call_operand.hbm [shape: bf16[2,512,256], index: 6, kind: input, shape index: {}]   ;;  %s3174_s7 = inlined_call_operand.hbm [shape: bf16[2,256,128], index: 7, kind: input, shape index: {}]   ;;  %s3175_s8 = inlined_call_operand.vmem [shape: f32[2,3,512], index: 8, kind: input, shape index: {}]   ;;  %s3176_s9 = inlined_call_operand.vmem [shape: f32[8,2], index: 9, kind: output, shape index: {}]  }
   0x1   :  { %15 = vsyncpa [#allocation5], 0 }
   0x2   :  { %16 = vsyncpa [#allocation8], 0 }
   0x3   :  { %17 = vsyncpa [#allocation11], 0  ;;  %s2872_s30 = smov [#allocation4]   ;;  %s2873_s11 = smov [#allocation7]  }
   0x4   :  { %s36_s10 = sshll.u32 %s2872_s30, 4  ;;  %s58_s12 = sshll.u32 %s2873_s11, 4  ;;  %s37_s10 = int_to_ptr.vmem [resolvable:$true] %s36_s10  ;;  %s59_s12 = int_to_ptr.vmem [resolvable:$true] %s58_s12 }
   0x5   :  { %s2732_s15 = scalar_lea.hbm %s3169_s2, 128 }
   0x6   :  { %p2733_p0 = scmp.ne.s32.totalorder %s3169_s2, %s2732_s15  ;;  %p2736_p1 = scmp.lt.u32.totalorder %s2732_s15, %s3169_s2 }
   0x8   :  { %p2738_p2 = pnand %p2736_p1, %p2733_p0 }
   0xa   :  { %2741 = shalt.err (!%p2738_p2)
}
   0xb   :  { %s2742_s20 = scalar_lea.vmem %s37_s10, 128  ;;  %p2747_p4 = scmp.lt.s32.totalorder %s37_s10, %s37_s10 }
   0xc   :  { %p2743_p3 = scmp.ne.s32.totalorder %s37_s10, %s2742_s20  ;;  %p2748_p5 = scmp.lt.s32.totalorder %s2742_s20, %s2742_s20 }
   0xe   :  { %p2749_p6 = por %p2748_p5, %p2747_p4 }
  0x10   :  { %p2750_p7 = pnand %p2749_p6, %p2743_p3 }
  0x12   :  { %2753 = shalt.err (!%p2750_p7)
}
  0x13   :  { %39 = dma.hbm_to_vmem [thread:$0]  %s3169_s2, 128, %s37_s10, [#allocation5]  }
  0x14   :  { %s2754_s25 = scalar_lea.hbm %s3172_s5, 512 }
  0x15   :  { %p2755_p8 = scmp.ne.s32.totalorder %s3172_s5, %s2754_s25  ;;  %p2758_p9 = scmp.lt.u32.totalorder %s2754_s25, %s3172_s5 }
  0x17   :  { %p2760_p10 = pnand %p2758_p9, %p2755_p8 }
  0x19   :  { %2763 = shalt.err (!%p2760_p10)
}
  0x1a   :  { %s2764_s30 = scalar_lea.vmem %s59_s12, 512  ;;  %p2769_p12 = scmp.lt.s32.totalorder %s59_s12, %s59_s12 }
  0x1b   :  { %p2765_p11 = scmp.ne.s32.totalorder %s59_s12, %s2764_s30  ;;  %p2770_p13 = scmp.lt.s32.totalorder %s2764_s30, %s2764_s30 }
  0x1d   :  { %p2771_p0 = por %p2770_p13, %p2769_p12 }
  0x1f   :  { %p2772_p1 = pnand %p2771_p0, %p2765_p11 }
  0x21   :  { %2775 = shalt.err (!%p2772_p1)
}
  0x22   :  { %61 = dma.hbm_to_vmem [thread:$0]  %s3172_s5, 512, %s59_s12, [#allocation8]  }
  0x23   :  { %s2874_s11 = smov [#allocation2]   ;;  %s2875_s14 = smov [#allocation6]  }
  0x24   :  { %s26_s13 = sshll.u32 %s2874_s11, 4  ;;  %s48_s15 = sshll.u32 %s2875_s14, 4  ;;  %s27_s13 = int_to_ptr.vmem [resolvable:$true] %s26_s13  ;;  %s49_s15 = int_to_ptr.vmem [resolvable:$true] %s48_s15 }
  0x25   :  { %s2776_s18 = scalar_lea.hbm %s3168_s1, 128 }
  0x26   :  { %p2777_p2 = scmp.ne.s32.totalorder %s3168_s1, %s2776_s18  ;;  %p2780_p3 = scmp.lt.u32.totalorder %s2776_s18, %s3168_s1 }
  0x28   :  { %p2782_p4 = pnand %p2780_p3, %p2777_p2 }
  0x2a   :  { %2785 = shalt.err (!%p2782_p4)
}
  0x2b   :  { %s2786_s5 = scalar_lea.vmem %s27_s13, 128  ;;  %p2791_p6 = scmp.lt.s32.totalorder %s27_s13, %s27_s13 }
  0x2c   :  { %p2787_p5 = scmp.ne.s32.totalorder %s27_s13, %s2786_s5  ;;  %p2792_p7 = scmp.lt.s32.totalorder %s2786_s5, %s2786_s5 }
  0x2e   :  { %p2793_p8 = por %p2792_p7, %p2791_p6 }
  0x30   :  { %p2794_p9 = pnand %p2793_p8, %p2787_p5 }
  0x32   :  { %2797 = shalt.err (!%p2794_p9)
}
  0x33   :  { %29 = dma.hbm_to_vmem [thread:$0]  %s3168_s1, 128, %s27_s13, [#allocation3]  }
  0x34   :  { %s2798_s26 = scalar_lea.hbm %s3171_s4, 512 }
  0x35   :  { %p2799_p10 = scmp.ne.s32.totalorder %s3171_s4, %s2798_s26  ;;  %p2802_p11 = scmp.lt.u32.totalorder %s2798_s26, %s3171_s4 }
  0x37   :  { %p2804_p12 = pnand %p2802_p11, %p2799_p10 }
  0x39   :  { %2807 = shalt.err (!%p2804_p12)
}
  0x3a   :  { %s2808_s2 = scalar_lea.vmem %s49_s15, 512  ;;  %p2813_p0 = scmp.lt.s32.totalorder %s49_s15, %s49_s15 }
  0x3b   :  { %p2809_p13 = scmp.ne.s32.totalorder %s49_s15, %s2808_s2  ;;  %p2814_p1 = scmp.lt.s32.totalorder %s2808_s2, %s2808_s2 }
  0x3d   :  { %p2815_p2 = por %p2814_p1, %p2813_p0 }
  0x3f   :  { %p2816_p3 = pnand %p2815_p2, %p2809_p13 }
  0x41   :  { %2819 = shalt.err (!%p2816_p3)
}
  0x42   :  { %51 = dma.hbm_to_vmem [thread:$0]  %s3171_s4, 512, %s49_s15, [#allocation5]  }
  0x43   :  { %s2876_s11 = smov [#allocation9]   ;;  %s2820_s17 = scalar_lea.hbm %s3173_s6, 16384 }
  0x44   :  { %s67_s13 = sshll.u32 %s2876_s11, 4  ;;  %p2821_p4 = scmp.ne.s32.totalorder %s3173_s6, %s2820_s17  ;;  %s68_s13 = int_to_ptr.vmem [resolvable:$true] %s67_s13 }
  0x45   :  { %p2824_p5 = scmp.lt.u32.totalorder %s2820_s17, %s3173_s6 }
  0x47   :  { %p2826_p6 = pnand %p2824_p5, %p2821_p4 }
  0x49   :  { %2829 = shalt.err (!%p2826_p6)
}
  0x4a   :  { %s2830_s22 = scalar_lea.vmem %s68_s13, 16384  ;;  %p2835_p8 = scmp.lt.s32.totalorder %s68_s13, %s68_s13 }
  0x4b   :  { %p2831_p7 = scmp.ne.s32.totalorder %s68_s13, %s2830_s22  ;;  %p2836_p9 = scmp.lt.s32.totalorder %s2830_s22, %s2830_s22 }
  0x4d   :  { %p2837_p10 = por %p2836_p9, %p2835_p8 }
  0x4f   :  { %p2838_p11 = pnand %p2837_p10, %p2831_p7 }
  0x51   :  { %2841 = shalt.err (!%p2838_p11)
}
  0x52   :  { %s2877_s4 = smov 128   ;;  %s2878_s15 = smov 8  }
  0x53   :  { %73 = dma.hbm_to_vmem [thread:$0]  %s3173_s6, 16384, %s68_s13, [#allocation8], %s2877_s4, %s2877_s4, %s2878_s15  }
  0x54   :  { %s2879_s23 = smov [#allocation10]   ;;  %s2842_s27 = scalar_lea.hbm %s3174_s7, 4096 }
  0x55   :  { %s79_s24 = sshll.u32 %s2879_s23, 4  ;;  %p2843_p12 = scmp.ne.s32.totalorder %s3174_s7, %s2842_s27  ;;  %s80_s24 = int_to_ptr.vmem [resolvable:$true] %s79_s24 }
  0x56   :  { %p2846_p13 = scmp.lt.u32.totalorder %s2842_s27, %s3174_s7 }
  0x58   :  { %p2848_p0 = pnand %p2846_p13, %p2843_p12 }
  0x5a   :  { %2851 = shalt.err (!%p2848_p0)
}
  0x5b   :  { %s2852_s1 = scalar_lea.vmem %s80_s24, 4096  ;;  %p2857_p2 = scmp.lt.s32.totalorder %s80_s24, %s80_s24 }
  0x5c   :  { %p2853_p1 = scmp.ne.s32.totalorder %s80_s24, %s2852_s1  ;;  %p2858_p3 = scmp.lt.s32.totalorder %s2852_s1, %s2852_s1 }
  0x5e   :  { %p2859_p4 = por %p2858_p3, %p2857_p2 }
  0x60   :  { %p2860_p5 = pnand %p2859_p4, %p2853_p1 }
  0x62   :  { %2863 = shalt.err (!%p2860_p5)
}
  0x63   :  { %s2880_s6 = smov 64   ;;  %s2881_s10 = smov 4  }
  0x64   :  { %85 = dma.hbm_to_vmem [thread:$0]  %s3174_s7, 4096, %s80_s24, [#allocation11], %s2880_s6, %s2880_s6, %s2881_s10  }
  0x65   :  { %2864 = dma.done.wait [#allocation3], 128  }
  0x66   :  { %2865 = vsyncadd [#allocation3], 4294967168 }
  0x67   :  { %2866 = dma.done.wait [#allocation5], 640  }
  0x68   :  { %2867 = vsyncadd [#allocation5], 4294966656 }
  0x69   :  { %2868 = dma.done.wait [#allocation8], 16896  }
  0x6a   :  { %2869 = vsyncadd [#allocation8], 4294950400 }
  0x6b   :  { %2870 = dma.done.wait [#allocation11], 4096  }
  0x6c   :  { %2871 = vsyncadd [#allocation11], 4294963200  ;;  %v2882_v0 = vmov 0   ;;  %v121_v1 = vld [vmem:[#allocation6] sm:$0xff]  ;;  %vm149_vm0 = vcmask 1043456   ;;  %v109_v2 = vld [vmem:[#allocation2] sm:$0xff] }
  0x6d   :  { %206 = vmatprep.mubr.bf16.mxu0 %v2882_v0  ;;  %247 = vmatprep.mubr.bf16.mxu1 %v2882_v0  ;;  %v123_v3 = vld [vmem:[#allocation6 + $0x10] sm:$0xff]  ;;  %v2208_v4 = vcombine.high %v121_v1, %v121_v1  ;;  %v2207_v5 = vcombine.low %v121_v1, %v121_v1  ;;  %v110_v11 = vpack.c.bf16 %v109_v2, %v109_v2  ;;  %v122_v12 = vld [vmem:[#allocation6 + $0x8] sm:$0xff]  ;;  %vm145_vm1 = vcmask 64512   ;;  %v124_v15 = vld [vmem:[#allocation6 + $0x18] sm:$0xff] }
  0x6e   :  { %2490 = vset.pattern.permute.xlu1 %v2882_v0  ;;  %2491 = vset.pattern.permute.xlu0 %v2882_v0  ;;  %v2212_v6 = vcombine.high %v123_v3, %v123_v3  ;;  %v2211_v7 = vcombine.low %v123_v3, %v123_v3  ;;  %v113_v8 = vld [vmem:[%s3170_s3] sm:$0xff]  ;;  %v2210_v13 = vcombine.high %v122_v12, %v122_v12  ;;  %v114_v19 = vld [vmem:[%s3170_s3 + $0x8] sm:$0xff]  ;;  %v115_v25 = vld [vmem:[%s3170_s3 + $0x10] sm:$0xff]  ;;  %vm378_vm2 = vcmask 130048  }
  0x6f   :  { %v117_v9 = vld [vmem:[%s3170_s3 + $0x20] sm:$0xff]  ;;  %2215 = vmatprep.subr.msk.bf16.mxu0 %vm149_vm0, %v2208_v4  ;;  %v151_v10 = vsel %vm149_vm0, %v2207_v5, 0  ;;  %v2209_v14 = vcombine.low %v122_v12, %v122_v12  ;;  %v2214_v18 = vcombine.high %v124_v15, %v124_v15  ;;  %v118_v20 = vld [vmem:[%s3170_s3 + $0x28] sm:$0xff]  ;;  %v2213_v22 = vcombine.low %v124_v15, %v124_v15  ;;  %v119_v26 = vld [vmem:[%s3170_s3 + $0x30] sm:$0xff] }
  0x70   :  { %175 = vmatpush1.bf16.msra.mxu0 %v151_v10  ;;  %v163_v16 = vsel %vm149_vm0, %v2211_v7, 0  ;;  %v2224_v17 = vcombine.high %v113_v8, %v117_v9  ;;  %2217 = vmatprep.subr.msk.bf16.mxu1 %vm149_vm0, %v2210_v13  ;;  %v2226_v24 = vcombine.high %v114_v19, %v118_v20  ;;  %v2223_v27 = vcombine.low %v113_v8, %v117_v9  ;;  %v116_v28 = vld [vmem:[%s3170_s3 + $0x18] sm:$0xff]  ;;  %v107_v31 = vld [vmem:[%s3167_s0] sm:$0xff]  ;;  %v546_v33 = vld [vmem:[#allocation7] sm:$0xff] }
  0x71   :  { %2219 = vmatprep.subr.msk.bf16.mxu0 %vm149_vm0, %v2212_v6  ;;  %v157_v21 = vsel %vm149_vm0, %v2209_v14, 0  ;;  %v169_v23 = vsel %vm149_vm0, %v2213_v22, 0  ;;  %v2228_v29 = vcombine.high %v115_v25, %v119_v26  ;;  %v120_v30 = vld [vmem:[%s3170_s3 + $0x38] sm:$0xff]  ;;  %v2225_v32 = vcombine.low %v114_v19, %v118_v20  ;;  %v548_v39 = vld [vmem:[#allocation7 + $0x10] sm:$0xff]  ;;  %v549_v40 = vld [vmem:[#allocation7 + $0x18] sm:$0xff] }
  0x72   :  { %216 = vmatpush1.bf16.msra.mxu1 %v157_v21  ;;  %v2230_v34 = vcombine.high %v116_v28, %v120_v30  ;;  %v108_v35 = vpack.c.bf16 %v107_v31, %v107_v31  ;;  %v547_v36 = vld [vmem:[#allocation7 + $0x8] sm:$0xff]  ;;  %v2227_v37 = vcombine.low %v115_v25, %v119_v26  ;;  %v2236_v38 = vcombine.high %v546_v33, %v546_v33  ;;  %v111_v49 = vld [vmem:[#allocation4] sm:$0xff] }
  0x73   :  { %2216 = vmatmul.mubr.msk.bf16.vlgmr.msra.gmra.mrb[0].mxu0 %vm145_vm1, %v110_v11  ;;  %2221 = vmatprep.subr.msk.bf16.mxu1 %vm149_vm0, %v2214_v18  ;;  %v2229_v41 = vcombine.low %v116_v28, %v120_v30  ;;  %v2238_v42 = vcombine.high %v547_v36, %v547_v36  ;;  %v2235_v43 = vcombine.low %v546_v33, %v546_v33  ;;  %v2510_v55 = vld [vmem:[#allocation9 + $0x4] ss:$8 sps:$4 sm:$0xff]   ;;  %v2508_v56 = vld [vmem:[#allocation9] ss:$8 sps:$4 sm:$0xff]   ;;  %v2513_v57 = vld [vmem:[#allocation9 + $0x14] ss:$8 sps:$4 sm:$0xff]  }
  0x74   :  { %257 = vmatpush1.bf16.msra.mxu0 %v163_v16  ;;  %288 = vmatprep.mubr.bf16.mxu0 %v2882_v0  ;;  %v2239_v44 = vcombine.low %v548_v39, %v548_v39  ;;  %v2237_v45 = vcombine.low %v547_v36, %v547_v36  ;;  %v2241_v46 = vcombine.low %v549_v40, %v549_v40  ;;  %v2511_v58 = vld [vmem:[#allocation9 + $0x10] ss:$8 sps:$4 sm:$0xff]   ;;  %v2516_v59 = vld [vmem:[#allocation9 + $0x24] ss:$8 sps:$4 sm:$0xff]   ;;  %v2514_v60 = vld [vmem:[#allocation9 + $0x20] ss:$8 sps:$4 sm:$0xff]  }
  0x75   :  { %382 = vmatprep.subr.bf16.mxu0 %v2224_v17  ;;  %2218 = vmatmul.mubr.msk.bf16.vlgmr.msra.gmra.mrb[0].mxu1 %vm145_vm1, %v110_v11  ;;  %v574_v47 = vsel %vm149_vm0, %v2235_v43, 0  ;;  %v2240_v48 = vcombine.high %v548_v39, %v548_v39  ;;  %v2242_v53 = vcombine.high %v549_v40, %v549_v40  ;;  %v112_v54 = vpack.c.bf16 %v111_v49, %v111_v49  ;;  %v2519_v61 = vld [vmem:[#allocation9 + $0x34] ss:$8 sps:$4 sm:$0xff]   ;;  %v2517_v62 = vld [vmem:[#allocation9 + $0x30] ss:$8 sps:$4 sm:$0xff]   ;;  %v2604_v33 = vld [vmem:[#allocation10 + $0x40] sm:$0xff]  }
  0x76   :  { %298 = vmatpush1.bf16.msra.mxu1 %v169_v23  ;;  %329 = vmatprep.mubr.bf16.mxu1 %v2882_v0  ;;  %v586_v50 = vsel %vm149_vm0, %v2239_v44, 0  ;;  %v580_v51 = vsel %vm149_vm0, %v2237_v45, 0  ;;  %v592_v52 = vsel %vm149_vm0, %v2241_v46, 0  ;;  %v2522_v63 = vld [vmem:[#allocation9 + $0x44] ss:$8 sps:$4 sm:$0xff]   ;;  %v2610_v39 = vld [vmem:[#allocation10 + $0x58] sm:$0xff]  }
  0x77   :  { %423 = vmatprep.subr.bf16.mxu1 %v2226_v24  ;;  %v2520_v1 = vld [vmem:[#allocation9 + $0x40] ss:$8 sps:$4 sm:$0xff]   ;;  %v2525_v2 = vld [vmem:[#allocation9 + $0x54] ss:$8 sps:$4 sm:$0xff]   ;;  %v2528_v3 = vld [vmem:[#allocation9 + $0x64] ss:$8 sps:$4 sm:$0xff]   ;;  %v872_v24 = vlaneseq }
  0x78   :  { %v2526_v4 = vld [vmem:[#allocation9 + $0x60] ss:$8 sps:$4 sm:$0xff]   ;;  %v2529_v5 = vld [vmem:[#allocation9 + $0x70] ss:$8 sps:$4 sm:$0xff]   ;;  %v2531_v6 = vld [vmem:[#allocation9 + $0x74] ss:$8 sps:$4 sm:$0xff]  }
  0x79   :  { %v2534_v7 = vld [vmem:[#allocation9 + $0x84] ss:$8 sps:$4 sm:$0xff]   ;;  %v2532_v8 = vld [vmem:[#allocation9 + $0x80] ss:$8 sps:$4 sm:$0xff]   ;;  %v2535_v9 = vld [vmem:[#allocation9 + $0x90] ss:$8 sps:$4 sm:$0xff]  }
  0x7a   :  { %v2537_v10 = vld [vmem:[#allocation9 + $0x94] ss:$8 sps:$4 sm:$0xff]   ;;  %v2538_v12 = vld [vmem:[#allocation9 + $0xa0] ss:$8 sps:$4 sm:$0xff]   ;;  %v2541_v13 = vld [vmem:[#allocation9 + $0xb0] ss:$8 sps:$4 sm:$0xff]  }
  0x7b   :  { %2220 = vmatmul.mubr.msk.bf16.vlgmr.msra.gmra.mrb[4].mxu0 %vm145_vm1, %v110_v11  ;;  %v2543_v14 = vld [vmem:[#allocation9 + $0xb4] ss:$8 sps:$4 sm:$0xff]   ;;  %v2546_v15 = vld [vmem:[#allocation9 + $0xc4] ss:$8 sps:$4 sm:$0xff]   ;;  %v2544_v16 = vld [vmem:[#allocation9 + $0xc0] ss:$8 sps:$4 sm:$0xff]  }
  0x7c   :  { %383 = vmatpush1.bf16.msra.mxu0 %v2223_v27  ;;  %414 = vmatprep.mubr.bf16.mxu0 %v2882_v0  ;;  %v2547_v17 = vld [vmem:[#allocation9 + $0xd0] ss:$8 sps:$4 sm:$0xff]   ;;  %v2549_v18 = vld [vmem:[#allocation9 + $0xd4] ss:$8 sps:$4 sm:$0xff]   ;;  %v2552_v19 = vld [vmem:[#allocation9 + $0xe4] ss:$8 sps:$4 sm:$0xff]  }
  0x7d   :  { %464 = vmatprep.subr.bf16.mxu0 %v2228_v29  ;;  %2222 = vmatmul.mubr.msk.bf16.vlgmr.msra.gmra.mrb[4].mxu1 %vm145_vm1, %v110_v11  ;;  %v2540_v11 = vld [vmem:[#allocation9 + $0xa4] ss:$8 sps:$4 sm:$0xff]   ;;  %v2550_v20 = vld [vmem:[#allocation9 + $0xe0] ss:$8 sps:$4 sm:$0xff]   ;;  %v2555_v21 = vld [vmem:[#allocation9 + $0xf4] ss:$8 sps:$4 sm:$0xff]  }
  0x7e   :  { %424 = vmatpush1.bf16.msra.mxu1 %v2225_v32  ;;  %455 = vmatprep.mubr.bf16.mxu1 %v2882_v0  ;;  %v2553_v22 = vld [vmem:[#allocation9 + $0xf0] ss:$8 sps:$4 sm:$0xff]   ;;  %v2558_v23 = vld [vmem:[#allocation9 + $0x104] ss:$8 sps:$4 sm:$0xff]   ;;  %v3075_v25 = vshrl.u32 %v872_v24, 7  ;;  %vm2196_vm4 = vcmask 15360  }
  0x7f   :  { %505 = vmatprep.subr.bf16.mxu1 %v2230_v34  ;;  %v3081_v27 = vld [vmem:[%s3175_s8] ss:$4 sm:$0xf]  ;;  %v3090_v30 = vld [vmem:[%s3175_s8 + $0x10] ss:$4 sm:$0xf] }
  0x80   :  { %v882_v26 = vsub.s32 2, %v3075_v25  ;;  %v886_v29 = vsub.s32 3, %v3075_v25  ;;  %v2605_v34 = vld [vmem:[#allocation10] sm:$0xff]   ;;  %v2607_v36 = vld [vmem:[#allocation10 + $0x8] sm:$0xff]   ;;  %v2611_v40 = vld [vmem:[#allocation10 + $0x18] sm:$0xff]  }
  0x81   :  { %v2614_v43 = vld [vmem:[#allocation10 + $0x68] sm:$0xff]  }
  0x82   :  { %v3084_v28 = vrot.slane %v3081_v27, %v882_v26  ;;  %v3093_v31 = vrot.slane %v3090_v30, %v882_v26  ;;  %v3098_v32 = vrot.slane %v3090_v30, %v886_v29  ;;  %v2615_v44 = vld [vmem:[#allocation10 + $0x28] sm:$0xff]  }
  0x83   :  { %2231 = vmatmul.mubr.msk.bf16.vlgmr.msra.gmra.mrb[8].mxu0 %vm378_vm2, %v108_v35 }
  0x84   :  { %465 = vmatpush1.bf16.msra.mxu0 %v2227_v37  ;;  %496 = vmatprep.mubr.bf16.mxu0 %v2882_v0  ;;  %v2608_v37 = vld [vmem:[#allocation10 + $0x50] sm:$0xff]  }
  0x85   :  { %2243 = vmatprep.subr.msk.bf16.mxu0 %vm149_vm0, %v2236_v38  ;;  %2232 = vmatmul.mubr.msk.bf16.vlgmr.msra.gmra.mrb[8].mxu1 %vm378_vm2, %v108_v35  ;;  %v2609_v38 = vld [vmem:[#allocation10 + $0x10] sm:$0xff]  }
  0x86   :  { %506 = vmatpush1.bf16.msra.mxu1 %v2229_v41  ;;  %537 = vmatprep.mubr.bf16.mxu1 %v2882_v0  ;;  %v2612_v41 = vld [vmem:[#allocation10 + $0x60] sm:$0xff]  }
  0x87   :  { %2245 = vmatprep.subr.msk.bf16.mxu1 %vm149_vm0, %v2238_v42  ;;  %v2613_v42 = vld [vmem:[#allocation10 + $0x20] sm:$0xff]  }
  0x8b   :  { %2233 = vmatmul.mubr.msk.bf16.vlgmr.msra.gmra.mrb[12].mxu0 %vm378_vm2, %v108_v35 }
  0x8c   :  { %598 = vmatpush1.bf16.msra.mxu0 %v574_v47  ;;  %629 = vmatprep.mubr.bf16.mxu0 %v2882_v0 }
  0x8d   :  { %2247 = vmatprep.subr.msk.bf16.mxu0 %vm149_vm0, %v2240_v48  ;;  %2234 = vmatmul.mubr.msk.bf16.vlgmr.msra.gmra.mrb[12].mxu1 %vm378_vm2, %v108_v35  ;;  %v2606_v35 = vld [vmem:[#allocation10 + $0x48] sm:$0xff]  }
  0x8e   :  { %639 = vmatpush1.bf16.msra.mxu1 %v580_v51  ;;  %670 = vmatprep.mubr.bf16.mxu1 %v2882_v0 }
  0x8f   :  { %2249 = vmatprep.subr.msk.bf16.mxu1 %vm149_vm0, %v2242_v53 }
  0x93   :  { %2244 = vmatmul.mubr.msk.bf16.vlgmr.msra.gmra.mrb[16].mxu0 %vm145_vm1, %v112_v54 }
  0x94   :  { %680 = vmatpush1.bf16.msra.mxu0 %v586_v50  ;;  %711 = vmatprep.mubr.bf16.mxu0 %v2882_v0 }
  0x95   :  { %1235 = vmatprep.subr.bf16.mxu0 %v2510_v55  ;;  %2246 = vmatmul.mubr.msk.bf16.vlgmr.msra.gmra.mrb[16].mxu1 %vm145_vm1, %v112_v54 }
  0x96   :  { %721 = vmatpush1.bf16.msra.mxu1 %v592_v52  ;;  %752 = vmatprep.mubr.bf16.mxu1 %v2882_v0  ;;  %v2523_v0 = vld [vmem:[#allocation9 + $0x50] ss:$8 sps:$4 sm:$0xff]  }
  0x97   :  { %2423 = vmatprep.subr.bf16.mxu1 %v2604_v33 }
  0x9b   :  { %2248 = vmatmul.mubr.msk.bf16.vlgmr.msra.gmra.mrb[20].mxu0 %vm145_vm1, %v112_v54 }
  0x9c   :  { %1236 = vmatpush1.bf16.msra.mxu0 %v2508_v56 }
  0x9d   :  { %1237 = vmatprep.subr.bf16.mxu0 %v2513_v57  ;;  %2250 = vmatmul.mubr.msk.bf16.vlgmr.msra.gmra.mrb[20].mxu1 %vm145_vm1, %v112_v54 }
  0x9e   :  { %2424 = vmatpush3.bf16.msra.mxu1 %v2605_v34 }
  0x9f   :  { %2425 = vmatprep.subr.bf16.mxu1 %v2606_v35 }
  0xa0   :  { %1238 = vmatpush1.bf16.msra.mxu0 %v2511_v58 }
  0xa1   :  { %1239 = vmatprep.subr.bf16.mxu0 %v2516_v59 }
  0xa2   :  { %2426 = vmatpush3.bf16.msra.mxu1 %v2607_v36 }
  0xa3   :  { %2427 = vmatprep.subr.bf16.mxu1 %v2608_v37 }
  0xa4   :  { %1240 = vmatpush1.bf16.msra.mxu0 %v2514_v60 }
  0xa5   :  { %1241 = vmatprep.subr.bf16.mxu0 %v2519_v61 }
  0xa6   :  { %2428 = vmatpush3.bf16.msra.mxu1 %v2609_v38 }
  0xa7   :  { %2429 = vmatprep.subr.bf16.mxu1 %v2610_v39 }
  0xa8   :  { %1242 = vmatpush1.bf16.msra.mxu0 %v2517_v62 }
  0xa9   :  { %1243 = vmatprep.subr.bf16.mxu0 %v2522_v63 }
  0xaa   :  { %2430 = vmatpush3.bf16.msra.mxu1 %v2611_v40 }
  0xab   :  { %2431 = vmatprep.subr.bf16.mxu1 %v2612_v41  ;;  %v887_v41 = vrot.slane %v3081_v27, %v886_v29 }
  0xac   :  { %1244 = vmatpush1.bf16.msra.mxu0 %v2520_v1 }
  0xad   :  { %1245 = vmatprep.subr.bf16.mxu0 %v2525_v2 }
  0xae   :  { %2432 = vmatpush3.bf16.msra.mxu1 %v2613_v42 }
  0xaf   :  { %2433 = vmatprep.subr.bf16.mxu1 %v2614_v43 }
  0xb0   :  { %1246 = vmatpush1.bf16.msra.mxu0 %v2523_v0 }
  0xb1   :  { %1247 = vmatprep.subr.bf16.mxu0 %v2528_v3 }
  0xb2   :  { %2434 = vmatpush3.bf16.msra.mxu1 %v2615_v44 }
  0xb4   :  { %1248 = vmatpush1.bf16.msra.mxu0 %v2526_v4 }
  0xb5   :  { %1249 = vmatprep.subr.bf16.mxu0 %v2531_v6 }
  0xb8   :  { %1250 = vmatpush1.bf16.msra.mxu0 %v2529_v5 }
  0xb9   :  { %1251 = vmatprep.subr.bf16.mxu0 %v2534_v7 }
  0xbc   :  { %1252 = vmatpush1.bf16.msra.mxu0 %v2532_v8 }
  0xbd   :  { %1253 = vmatprep.subr.bf16.mxu0 %v2537_v10 }
  0xc0   :  { %1254 = vmatpush1.bf16.msra.mxu0 %v2535_v9 }
  0xc1   :  { %1255 = vmatprep.subr.bf16.mxu0 %v2540_v11 }
  0xc4   :  { %1256 = vmatpush1.bf16.msra.mxu0 %v2538_v12 }
  0xc5   :  { %1257 = vmatprep.subr.bf16.mxu0 %v2543_v14 }
  0xc8   :  { %1258 = vmatpush1.bf16.msra.mxu0 %v2541_v13 }
  0xc9   :  { %1259 = vmatprep.subr.bf16.mxu0 %v2546_v15  ;;  %v3101_v15 = vsub.s32 0, %v3075_v25 }
  0xcc   :  { %1260 = vmatpush1.bf16.msra.mxu0 %v2544_v16 }
  0xcd   :  { %1261 = vmatprep.subr.bf16.mxu0 %v2549_v18 }
  0xd0   :  { %1262 = vmatpush1.bf16.msra.mxu0 %v2547_v17  ;;  %v3104_v17 = vsub.s32 1, %v3075_v25 }
  0xd1   :  { %1263 = vmatprep.subr.bf16.mxu0 %v2552_v19 }
  0xd2   :  { %v879_v33 = vrot.slane %v3081_v27, %v3104_v17 }
  0xd4   :  { %1264 = vmatpush1.bf16.msra.mxu0 %v2550_v20 }
  0xd5   :  { %1265 = vmatprep.subr.bf16.mxu0 %v2555_v21 }
  0xd8   :  { %1266 = vmatpush1.bf16.msra.mxu0 %v2553_v22 }
  0xd9   :  { %1276 = vmatprep.subr.bf16.mxu0 %v2558_v23  ;;  %v875_v23 = vrot.slane %v3081_v27, %v3101_v15  ;;  %v2561_v27 = vld [vmem:[#allocation9 + $0x114] ss:$8 sps:$4 sm:$0xff]  }
 0x146   :  { %v208_v45 = vpop.f32.mrb[0].mxu0 }
 0x147   :  { %v210_v46 = vpop.f32.mrb[1].mxu0 }
 0x148   :  { %v212_v47 = vpop.f32.mrb[2].mxu0  ;;  %v249_v49 = vpop.f32.mrb[0].mxu1 }
 0x149   :  { %v213_v48 = vpop.f32.mrb[3].mxu0  ;;  %v251_v50 = vpop.f32.mrb[1].mxu1 }
 0x14a   :  { %v253_v51 = vpop.f32.mrb[2].mxu1 }
 0x14b   :  { %v254_v52 = vpop.f32.mrb[3].mxu1 }
 0x14e   :  { %v290_v53 = vpop.f32.mrb[4].mxu0 }
 0x14f   :  { %v292_v54 = vpop.f32.mrb[5].mxu0 }
 0x150   :  { %v294_v55 = vpop.f32.mrb[6].mxu0  ;;  %v331_v57 = vpop.f32.mrb[4].mxu1 }
 0x151   :  { %v295_v56 = vpop.f32.mrb[7].mxu0  ;;  %v333_v58 = vpop.f32.mrb[5].mxu1 }
 0x152   :  { %v335_v59 = vpop.f32.mrb[6].mxu1 }
 0x153   :  { %v336_v60 = vpop.f32.mrb[7].mxu1 }
 0x156   :  { %v416_v61 = vpop.f32.mrb[8].mxu0 }
 0x157   :  { %v417_v62 = vadd.f32 %v416_v61, %v208_v45  ;;  %v418_v63 = vpop.f32.mrb[9].mxu0  ;;  %v2559_v61 = vld [vmem:[#allocation9 + $0x110] ss:$8 sps:$4 sm:$0xff]  }
 0x158   :  { %v419_v1 = vadd.f32 %v418_v63, %v210_v46  ;;  %v420_v2 = vpop.f32.mrb[10].mxu0  ;;  %v457_v3 = vpop.f32.mrb[8].mxu1 }
 0x159   :  { %v421_v0 = vpop.f32.mrb[11].mxu0  ;;  %v458_v4 = vadd.f32 %v457_v3, %v249_v49  ;;  %v459_v5 = vpop.f32.mrb[9].mxu1 }
 0x15a   :  { %v460_v6 = vadd.f32 %v459_v5, %v251_v50  ;;  %v461_v7 = vpop.f32.mrb[10].mxu1 }
 0x15b   :  { %v462_v8 = vpop.f32.mrb[11].mxu1  ;;  %v2567_v7 = vld [vmem:[#allocation9 + $0x134] ss:$8 sps:$4 sm:$0xff]  }
 0x15c   :  { %v2565_v8 = vld [vmem:[#allocation9 + $0x130] ss:$8 sps:$4 sm:$0xff]  }
 0x15e   :  { %v498_v9 = vpop.f32.mrb[12].mxu0 }
 0x15f   :  { %v499_v10 = vadd.f32 %v498_v9, %v290_v53  ;;  %v500_v11 = vpop.f32.mrb[13].mxu0  ;;  %v2570_v9 = vld [vmem:[#allocation9 + $0x144] ss:$8 sps:$4 sm:$0xff]  }
 0x160   :  { %v501_v12 = vadd.f32 %v500_v11, %v292_v54  ;;  %v502_v13 = vpop.f32.mrb[14].mxu0  ;;  %v539_v16 = vpop.f32.mrb[12].mxu1  ;;  %v2556_v54 = vld [vmem:[#allocation9 + $0x100] ss:$8 sps:$4 sm:$0xff]   ;;  %v2573_v11 = vld [vmem:[#allocation9 + $0x154] ss:$8 sps:$4 sm:$0xff]  }
 0x161   :  { %v503_v14 = vpop.f32.mrb[15].mxu0  ;;  %v540_v18 = vadd.f32 %v539_v16, %v331_v57  ;;  %v541_v19 = vpop.f32.mrb[13].mxu1  ;;  %v2574_v13 = vld [vmem:[#allocation9 + $0x160] ss:$8 sps:$4 sm:$0xff]   ;;  %v2582_v16 = vld [vmem:[#allocation9 + $0x184] ss:$8 sps:$4 sm:$0xff]  }
 0x162   :  { %v542_v20 = vadd.f32 %v541_v19, %v333_v58  ;;  %v543_v21 = vpop.f32.mrb[14].mxu1  ;;  %v2577_v14 = vld [vmem:[#allocation9 + $0x170] ss:$8 sps:$4 sm:$0xff]   ;;  %v2585_v19 = vld [vmem:[#allocation9 + $0x194] ss:$8 sps:$4 sm:$0xff]  }
 0x163   :  { %v544_v22 = vpop.f32.mrb[15].mxu1  ;;  %v2588_v21 = vld [vmem:[#allocation9 + $0x1a4] ss:$8 sps:$4 sm:$0xff]  }
 0x164   :  { %v2586_v22 = vld [vmem:[#allocation9 + $0x1a0] ss:$8 sps:$4 sm:$0xff]  }
 0x166   :  { %v631_v26 = vpop.f32.mrb[16].mxu0 }
 0x167   :  { %v761_v34 = vadd.f32 %v631_v26, %v417_v62  ;;  %v633_v35 = vpop.f32.mrb[17].mxu0  ;;  %v2589_v26 = vld [vmem:[#allocation9 + $0x1b0] ss:$8 sps:$4 sm:$0xff]  }
 0x168   :  { %v762_v36 = vadd.f32 %v633_v35, %v419_v1  ;;  %v635_v37 = vpop.f32.mrb[18].mxu0  ;;  %v672_v40 = vpop.f32.mrb[16].mxu1  ;;  %v2564_v1 = vld [vmem:[#allocation9 + $0x124] ss:$8 sps:$4 sm:$0xff]   ;;  %v2597_v35 = vld [vmem:[#allocation9 + $0x1d4] ss:$8 sps:$4 sm:$0xff]  }
 0x169   :  { %v892_v38 = vadd.f32 %v875_v23, %v761_v34  ;;  %v636_v39 = vpop.f32.mrb[19].mxu0  ;;  %v763_v43 = vadd.f32 %v672_v40, %v458_v4  ;;  %v674_v44 = vpop.f32.mrb[17].mxu1  ;;  %v2591_v23 = vld [vmem:[#allocation9 + $0x1b4] ss:$8 sps:$4 sm:$0xff]   ;;  %v2592_v34 = vld [vmem:[#allocation9 + $0x1c0] ss:$8 sps:$4 sm:$0xff]  }
 0x16a   :  { %v893_v42 = vadd.f32 %v879_v33, %v762_v36  ;;  %v764_v46 = vadd.f32 %v674_v44, %v460_v6  ;;  %v676_v47 = vpop.f32.mrb[18].mxu1  ;;  %v2562_v6 = vld [vmem:[#allocation9 + $0x120] ss:$8 sps:$4 sm:$0xff]   ;;  %v2594_v33 = vld [vmem:[#allocation9 + $0x1c4] ss:$8 sps:$4 sm:$0xff]   ;;  %v2617_v44 = vld [vmem:[#allocation10 + $0x30] sm:$0xff]  }
 0x16b   :  { %v896_v45 = vmax.f32 %v892_v38, 0.0  ;;  %v3114_v49 = vadd.f32 %v3084_v28, %v763_v43  ;;  %v677_v50 = vpop.f32.mrb[19].mxu1  ;;  %v2595_v36 = vld [vmem:[#allocation9 + $0x1d0] ss:$8 sps:$4 sm:$0xff]   ;;  %v2600_v37 = vld [vmem:[#allocation9 + $0x1e4] ss:$8 sps:$4 sm:$0xff]  }
 0x16c   :  { %v897_v48 = vmax.f32 %v893_v42, 0.0  ;;  %v895_v51 = vadd.f32 %v887_v41, %v764_v46  ;;  %v2598_v38 = vld [vmem:[#allocation9 + $0x1e0] ss:$8 sps:$4 sm:$0xff]   ;;  %v2603_v39 = vld [vmem:[#allocation9 + $0x1f4] ss:$8 sps:$4 sm:$0xff]  }
 0x16d   :  { %v900_v55 = vpack.c.bf16 %v896_v45, %v896_v45  ;;  %v2601_v40 = vld [vmem:[#allocation9 + $0x1f0] ss:$8 sps:$4 sm:$0xff]   ;;  %v898_v41 = vmax.f32 %v3114_v49, 0.0  ;;  %v2622_v47 = vld [vmem:[#allocation9 + $0x204] ss:$8 sps:$4 sm:$0xff]   ;;  %v1587_v49 = vrot.slane %v3090_v30, %v3104_v17 }
 0x16e   :  { %v901_v52 = vpack.c.bf16 %v897_v48, %v897_v48  ;;  %v713_v53 = vpop.f32.mrb[20].mxu0  ;;  %v899_v29 = vmax.f32 %v895_v51, 0.0  ;;  %v2616_v43 = vld [vmem:[#allocation10 + $0x70] sm:$0xff]   ;;  %v2618_v45 = vld [vmem:[#allocation10 + $0x78] sm:$0xff]  }
 0x16f   :  { %v3116_v56 = vadd.f32 %v713_v53, %v499_v10  ;;  %v715_v25 = vpop.f32.mrb[21].mxu0  ;;  %v2568_v10 = vld [vmem:[#allocation9 + $0x140] ss:$8 sps:$4 sm:$0xff]   ;;  %v902_v42 = vpack.c.bf16 %v898_v41, %v898_v41  ;;  %2435 = vmatprep.subr.bf16.mxu1 %v2616_v43  ;;  %v2619_v46 = vld [vmem:[#allocation10 + $0x38] sm:$0xff]  }
 0x170   :  { %v3118_v57 = vadd.f32 %v715_v25, %v501_v12  ;;  %1267 = vmatprep.mubr.bf16.mxu0 %v901_v52  ;;  %v717_v58 = vpop.f32.mrb[22].mxu0  ;;  %v903_v59 = vpack.c.bf16 %v899_v29, %v899_v29  ;;  %v754_v60 = vpop.f32.mrb[20].mxu1  ;;  %v2571_v12 = vld [vmem:[#allocation9 + $0x150] ss:$8 sps:$4 sm:$0xff]   ;;  %2436 = vmatpush3.bf16.msra.mxu1 %v2617_v44  ;;  %v2668_v44 = vld [vmem:[#allocation9 + $0x300] ss:$8 sps:$4 sm:$0xff]  }
 0x171   :  { %1268 = vmatmul.mubr.bf16.vlgmr.msra.gmra.mrb[24].mxu0 %v900_v55  ;;  %v718_v28 = vpop.f32.mrb[23].mxu0  ;;  %v767_v62 = vadd.f32 %v754_v60, %v540_v18  ;;  %v756_v63 = vpop.f32.mrb[21].mxu1  ;;  %v2580_v18 = vld [vmem:[#allocation9 + $0x180] ss:$8 sps:$4 sm:$0xff]   ;;  %2437 = vmatprep.subr.bf16.mxu1 %v2618_v45 }
 0x172   :  { %1277 = vmatpush1.bf16.msra.mxu0 %v2556_v54  ;;  %v768_v2 = vadd.f32 %v756_v63, %v542_v20  ;;  %1308 = vmatprep.mubr.bf16.mxu0 %v903_v59  ;;  %v758_v0 = vpop.f32.mrb[22].mxu1  ;;  %v2583_v20 = vld [vmem:[#allocation9 + $0x190] ss:$8 sps:$4 sm:$0xff]   ;;  %v1601_v52 = vadd.f32 %v1587_v49, %v3118_v57  ;;  %v2625_v63 = vld [vmem:[#allocation9 + $0x214] ss:$8 sps:$4 sm:$0xff]  }
 0x173   :  { %1278 = vmatprep.subr.bf16.mxu0 %v2561_v27  ;;  %v3121_v3 = vadd.f32 %v3093_v31, %v767_v62  ;;  %v759_v4 = vpop.f32.mrb[23].mxu1  ;;  %v2576_v31 = vld [vmem:[#allocation9 + $0x164] ss:$8 sps:$4 sm:$0xff]   ;;  %v2251_v48 = vld [vmem:[%s3175_s8 + $0x1] ss:$4 sm:$0x3] }
 0x174   :  { %v3124_v5 = vadd.f32 %v3098_v32, %v768_v2  ;;  %v2579_v32 = vld [vmem:[#allocation9 + $0x174] ss:$8 sps:$4 sm:$0xff]   ;;  %2438 = vmatpush3.bf16.msra.mxu1 %v2619_v46  ;;  %v908_v50 = vrot.slane %v2251_v48, %v3101_v15  ;;  %v912_v51 = vrot.slane %v2251_v48, %v3104_v17  ;;  %v1605_v59 = vmax.f32 %v1601_v52, 0.0  ;;  %v2623_v2 = vld [vmem:[#allocation9 + $0x210] ss:$8 sps:$4 sm:$0xff]  }
 0x175   :  { %1943 = vmatprep.subr.bf16.mxu1 %v2622_v47  ;;  %v2628_v57 = vld [vmem:[#allocation9 + $0x224] ss:$8 sps:$4 sm:$0xff]   ;;  %v2626_v0 = vld [vmem:[#allocation9 + $0x220] ss:$8 sps:$4 sm:$0xff]   ;;  %v2631_v4 = vld [vmem:[#allocation9 + $0x234] ss:$8 sps:$4 sm:$0xff]  }
 0x176   :  { %1279 = vmatpush1.bf16.msra.mxu0 %v2559_v61  ;;  %v2620_v61 = vld [vmem:[#allocation9 + $0x200] ss:$8 sps:$4 sm:$0xff]   ;;  %v1607_v43 = vmax.f32 %v3124_v5, 0.0  ;;  %v2671_v47 = vld [vmem:[#allocation9 + $0x310] ss:$8 sps:$4 sm:$0xff]  }
 0x177   :  { %1280 = vmatprep.subr.bf16.mxu0 %v2564_v1  ;;  %v1609_v1 = vpack.c.bf16 %v1605_v59, %v1605_v59  ;;  %v2674_v48 = vld [vmem:[#allocation9 + $0x320] ss:$8 sps:$4 sm:$0xff]   ;;  %v2679_v49 = vld [vmem:[#allocation9 + $0x334] ss:$8 sps:$4 sm:$0xff]   ;;  %v2682_v5 = vld [vmem:[#allocation9 + $0x344] ss:$8 sps:$4 sm:$0xff]  }
 0x178   :  { %v1611_v46 = vpack.c.bf16 %v1607_v43, %v1607_v43  ;;  %v2685_v52 = vld [vmem:[#allocation9 + $0x354] ss:$8 sps:$4 sm:$0xff]   ;;  %v2716_v59 = vld [vmem:[#allocation10 + $0xc0] sm:$0xff]  }
 0x17a   :  { %1281 = vmatpush1.bf16.msra.mxu0 %v2562_v6  ;;  %v2629_v6 = vld [vmem:[#allocation9 + $0x230] ss:$8 sps:$4 sm:$0xff]  }
 0x17b   :  { %1282 = vmatprep.subr.bf16.mxu0 %v2567_v7  ;;  %v2634_v7 = vld [vmem:[#allocation9 + $0x244] ss:$8 sps:$4 sm:$0xff]  }
 0x17e   :  { %1283 = vmatpush1.bf16.msra.mxu0 %v2565_v8  ;;  %v2632_v8 = vld [vmem:[#allocation9 + $0x240] ss:$8 sps:$4 sm:$0xff]  }
 0x17f   :  { %1284 = vmatprep.subr.bf16.mxu0 %v2570_v9  ;;  %v2637_v9 = vld [vmem:[#allocation9 + $0x254] ss:$8 sps:$4 sm:$0xff]  }
 0x182   :  { %1285 = vmatpush1.bf16.msra.mxu0 %v2568_v10  ;;  %v2635_v10 = vld [vmem:[#allocation9 + $0x250] ss:$8 sps:$4 sm:$0xff]  }
 0x183   :  { %1286 = vmatprep.subr.bf16.mxu0 %v2573_v11  ;;  %v2640_v11 = vld [vmem:[#allocation9 + $0x264] ss:$8 sps:$4 sm:$0xff]  }
 0x186   :  { %1287 = vmatpush1.bf16.msra.mxu0 %v2571_v12  ;;  %v2638_v12 = vld [vmem:[#allocation9 + $0x260] ss:$8 sps:$4 sm:$0xff]  }
 0x187   :  { %1288 = vmatprep.subr.bf16.mxu0 %v2576_v31  ;;  %v2643_v31 = vld [vmem:[#allocation9 + $0x274] ss:$8 sps:$4 sm:$0xff]  }
 0x18a   :  { %1289 = vmatpush1.bf16.msra.mxu0 %v2574_v13  ;;  %v2641_v13 = vld [vmem:[#allocation9 + $0x270] ss:$8 sps:$4 sm:$0xff]  }
 0x18b   :  { %1290 = vmatprep.subr.bf16.mxu0 %v2579_v32  ;;  %v2646_v32 = vld [vmem:[#allocation9 + $0x284] ss:$8 sps:$4 sm:$0xff]  }
 0x18e   :  { %1291 = vmatpush1.bf16.msra.mxu0 %v2577_v14  ;;  %v2644_v14 = vld [vmem:[#allocation9 + $0x280] ss:$8 sps:$4 sm:$0xff]  }
 0x18f   :  { %1292 = vmatprep.subr.bf16.mxu0 %v2582_v16  ;;  %v2649_v16 = vld [vmem:[#allocation9 + $0x294] ss:$8 sps:$4 sm:$0xff]  }
 0x192   :  { %1293 = vmatpush1.bf16.msra.mxu0 %v2580_v18  ;;  %v2647_v18 = vld [vmem:[#allocation9 + $0x290] ss:$8 sps:$4 sm:$0xff]  }
 0x193   :  { %1294 = vmatprep.subr.bf16.mxu0 %v2585_v19  ;;  %v2652_v19 = vld [vmem:[#allocation9 + $0x2a4] ss:$8 sps:$4 sm:$0xff]  }
 0x196   :  { %1295 = vmatpush1.bf16.msra.mxu0 %v2583_v20  ;;  %v2650_v20 = vld [vmem:[#allocation9 + $0x2a0] ss:$8 sps:$4 sm:$0xff]  }
 0x197   :  { %1296 = vmatprep.subr.bf16.mxu0 %v2588_v21  ;;  %v2655_v21 = vld [vmem:[#allocation9 + $0x2b4] ss:$8 sps:$4 sm:$0xff]  }
 0x19a   :  { %1297 = vmatpush1.bf16.msra.mxu0 %v2586_v22  ;;  %v2653_v22 = vld [vmem:[#allocation9 + $0x2b0] ss:$8 sps:$4 sm:$0xff]  }
 0x19b   :  { %1298 = vmatprep.subr.bf16.mxu0 %v2591_v23  ;;  %v2658_v23 = vld [vmem:[#allocation9 + $0x2c4] ss:$8 sps:$4 sm:$0xff]  }
 0x19e   :  { %1299 = vmatpush1.bf16.msra.mxu0 %v2589_v26  ;;  %v2656_v26 = vld [vmem:[#allocation9 + $0x2c0] ss:$8 sps:$4 sm:$0xff]  }
 0x19f   :  { %1300 = vmatprep.subr.bf16.mxu0 %v2594_v33  ;;  %v2661_v33 = vld [vmem:[#allocation9 + $0x2d4] ss:$8 sps:$4 sm:$0xff]  }
 0x1a2   :  { %1301 = vmatpush1.bf16.msra.mxu0 %v2592_v34  ;;  %v2659_v34 = vld [vmem:[#allocation9 + $0x2d0] ss:$8 sps:$4 sm:$0xff]  }
 0x1a3   :  { %1302 = vmatprep.subr.bf16.mxu0 %v2597_v35  ;;  %v1583_v35 = vrot.slane %v3090_v30, %v3101_v15  ;;  %v2673_v30 = vld [vmem:[#allocation9 + $0x314] ss:$8 sps:$4 sm:$0xff]  }
 0x1a6   :  { %1303 = vmatpush1.bf16.msra.mxu0 %v2595_v36  ;;  %v2664_v36 = vld [vmem:[#allocation9 + $0x2e4] ss:$8 sps:$4 sm:$0xff]  }
 0x1a7   :  { %1304 = vmatprep.subr.bf16.mxu0 %v2600_v37  ;;  %v2662_v37 = vld [vmem:[#allocation9 + $0x2e0] ss:$8 sps:$4 sm:$0xff]  }
 0x1aa   :  { %1305 = vmatpush1.bf16.msra.mxu0 %v2598_v38  ;;  %v1600_v38 = vadd.f32 %v1583_v35, %v3116_v56  ;;  %v2676_v56 = vld [vmem:[#allocation9 + $0x324] ss:$8 sps:$4 sm:$0xff]   ;;  %v2316_v35 = vld [vmem:[%s3175_s8 + $0x9] ss:$0 sm:$0xff] }
 0x1ab   :  { %1306 = vmatprep.subr.bf16.mxu0 %v2603_v39  ;;  %v2667_v39 = vld [vmem:[#allocation9 + $0x2f4] ss:$8 sps:$4 sm:$0xff]  }
 0x1ac   :  { %v1604_v41 = vmax.f32 %v1600_v38, 0.0 }
 0x1ae   :  { %1307 = vmatpush1.bf16.msra.mxu0 %v2601_v40  ;;  %v2665_v40 = vld [vmem:[#allocation9 + $0x2f0] ss:$8 sps:$4 sm:$0xff]   ;;  %v1608_v45 = vpack.c.bf16 %v1604_v41, %v1604_v41  ;;  %v2333_v41 = vld [vmem:[%s3175_s8 + $0xd] ss:$0 sm:$0xff] }
 0x1af   :  { %2445 = vmatprep.subr.bf16.mxu0 %v2716_v59 }
 0x1b1   :  { %1309 = vmatmul.mubr.bf16.vlgmr.msra.gmra.mrb[24].mxu0 %v902_v42  ;;  %v2670_v42 = vld [vmem:[#allocation9 + $0x304] ss:$8 sps:$4 sm:$0xff]  }
 0x284   :  { %v1310_v53 = vpop.f32.mrb[24].mxu0 }
 0x285   :  { %v2467_v54 = vadd.f32 %v1310_v53, %v908_v50  ;;  %v1312_v55 = vpop.f32.mrb[25].mxu0  ;;  %v2677_v50 = vld [vmem:[#allocation9 + $0x330] ss:$8 sps:$4 sm:$0xff]  }
 0x286   :  { %v2468_v25 = vadd.f32 %v1312_v55, %v912_v51  ;;  %v1314_v27 = vpop.f32.mrb[26].mxu0  ;;  %v2680_v51 = vld [vmem:[#allocation9 + $0x340] ss:$8 sps:$4 sm:$0xff]   ;;  %v2683_v53 = vld [vmem:[#allocation9 + $0x350] ss:$8 sps:$4 sm:$0xff]  }
 0x287   :  { %v1317_v29 = vmax.f32 %v2467_v54, 0.0  ;;  %v1315_v58 = vpop.f32.mrb[27].mxu0  ;;  %v2688_v54 = vld [vmem:[#allocation9 + $0x364] ss:$8 sps:$4 sm:$0xff]   ;;  %v2686_v55 = vld [vmem:[#allocation9 + $0x360] ss:$8 sps:$4 sm:$0xff]  }
 0x288   :  { %v1318_v60 = vmax.f32 %v2468_v25, 0.0  ;;  %v2691_v25 = vld [vmem:[#allocation9 + $0x374] ss:$8 sps:$4 sm:$0xff]   ;;  %v2689_v27 = vld [vmem:[#allocation9 + $0x370] ss:$8 sps:$4 sm:$0xff]  }
 0x289   :  { %v1319_v62 = vpack.c.bf16 %v1317_v29, %v1317_v29  ;;  %v2694_v29 = vld [vmem:[#allocation9 + $0x384] ss:$8 sps:$4 sm:$0xff]   ;;  %v2692_v58 = vld [vmem:[#allocation9 + $0x380] ss:$8 sps:$4 sm:$0xff]  }
 0x28a   :  { %v1320_v28 = vpack.c.bf16 %v1318_v60, %v1318_v60  ;;  %v2717_v60 = vld [vmem:[#allocation10 + $0x80] sm:$0xff]  }
 0x28b   :  { %2446 = vmatpush3.bf16.msra.mxu0 %v2717_v60 }
 0x28c   :  { %1453 = vmatprep.mubr.bf16.mxu1 %v1320_v28  ;;  %v2718_v28 = vld [vmem:[#allocation10 + $0xc8] sm:$0xff]  }
 0x28d   :  { %1454 = vmatmul.mubr.bf16.vlgmr.msra.gmra.mrb[24].mxu1 %v1319_v62  ;;  %v2719_v62 = vld [vmem:[#allocation10 + $0x88] sm:$0xff]   ;;  %2447 = vmatprep.subr.bf16.mxu0 %v2718_v28 }
 0x28e   :  { %1944 = vmatpush1.bf16.msra.mxu1 %v2620_v61  ;;  %1975 = vmatprep.mubr.bf16.mxu1 %v1609_v1  ;;  %v2697_v61 = vld [vmem:[#allocation9 + $0x394] ss:$8 sps:$4 sm:$0xff]   ;;  %v2421_v28 = vld [vmem:[%s3175_s8 + $0x1d] ss:$0 sm:$0xff] }
 0x28f   :  { %1945 = vmatprep.subr.bf16.mxu1 %v2625_v63  ;;  %v2695_v63 = vld [vmem:[#allocation9 + $0x390] ss:$8 sps:$4 sm:$0xff]   ;;  %2448 = vmatpush3.bf16.msra.mxu0 %v2719_v62 }
 0x290   :  { %v2720_v1 = vld [vmem:[#allocation10 + $0xd0] sm:$0xff]  }
 0x291   :  { %2449 = vmatprep.subr.bf16.mxu0 %v2720_v1 }
 0x292   :  { %1946 = vmatpush1.bf16.msra.mxu1 %v2623_v2  ;;  %v2700_v2 = vld [vmem:[#allocation9 + $0x3a4] ss:$8 sps:$4 sm:$0xff]  }
 0x293   :  { %1947 = vmatprep.subr.bf16.mxu1 %v2628_v57  ;;  %v2721_v57 = vld [vmem:[#allocation10 + $0x90] sm:$0xff]  }
 0x294   :  { %2450 = vmatpush3.bf16.msra.mxu0 %v2721_v57  ;;  %v2183_v57 = vand.u32 127, %v872_v24 }
 0x296   :  { %1948 = vmatpush1.bf16.msra.mxu1 %v2626_v0  ;;  %v2698_v0 = vld [vmem:[#allocation9 + $0x3a0] ss:$8 sps:$4 sm:$0xff]   ;;  %vm2184_vm3 = vcmp.eq.s32.totalorder %v2183_v57, 0 }
 0x297   :  { %1949 = vmatprep.subr.bf16.mxu1 %v2631_v4  ;;  %v2722_v4 = vld [vmem:[#allocation10 + $0xd8] sm:$0xff]  }
 0x298   :  { %2451 = vmatprep.subr.bf16.mxu0 %v2722_v4 }
 0x29a   :  { %1950 = vmatpush1.bf16.msra.mxu1 %v2629_v6  ;;  %v2703_v6 = vld [vmem:[#allocation9 + $0x3b4] ss:$8 sps:$4 sm:$0xff]  }
 0x29b   :  { %1951 = vmatprep.subr.bf16.mxu1 %v2634_v7  ;;  %v2723_v7 = vld [vmem:[#allocation10 + $0x98] sm:$0xff]  }
 0x29c   :  { %2452 = vmatpush3.bf16.msra.mxu0 %v2723_v7 }
 0x29e   :  { %1952 = vmatpush1.bf16.msra.mxu1 %v2632_v8  ;;  %v2701_v8 = vld [vmem:[#allocation9 + $0x3b0] ss:$8 sps:$4 sm:$0xff]  }
 0x29f   :  { %1953 = vmatprep.subr.bf16.mxu1 %v2637_v9  ;;  %v2724_v9 = vld [vmem:[#allocation10 + $0xe0] sm:$0xff]  }
 0x2a0   :  { %2453 = vmatprep.subr.bf16.mxu0 %v2724_v9 }
 0x2a2   :  { %1954 = vmatpush1.bf16.msra.mxu1 %v2635_v10  ;;  %v2706_v10 = vld [vmem:[#allocation9 + $0x3c4] ss:$8 sps:$4 sm:$0xff]  }
 0x2a3   :  { %1955 = vmatprep.subr.bf16.mxu1 %v2640_v11  ;;  %v2725_v11 = vld [vmem:[#allocation10 + $0xa0] sm:$0xff]  }
 0x2a4   :  { %2454 = vmatpush3.bf16.msra.mxu0 %v2725_v11 }
 0x2a6   :  { %1956 = vmatpush1.bf16.msra.mxu1 %v2638_v12  ;;  %v2704_v12 = vld [vmem:[#allocation9 + $0x3c0] ss:$8 sps:$4 sm:$0xff]  }
 0x2a7   :  { %1957 = vmatprep.subr.bf16.mxu1 %v2643_v31  ;;  %v2726_v31 = vld [vmem:[#allocation10 + $0xe8] sm:$0xff]  }
 0x2a8   :  { %2455 = vmatprep.subr.bf16.mxu0 %v2726_v31 }
 0x2aa   :  { %1958 = vmatpush1.bf16.msra.mxu1 %v2641_v13  ;;  %v2709_v13 = vld [vmem:[#allocation9 + $0x3d4] ss:$8 sps:$4 sm:$0xff]  }
 0x2ab   :  { %1959 = vmatprep.subr.bf16.mxu1 %v2646_v32  ;;  %v2727_v32 = vld [vmem:[#allocation10 + $0xa8] sm:$0xff]  }
 0x2ac   :  { %2456 = vmatpush3.bf16.msra.mxu0 %v2727_v32 }
 0x2ae   :  { %1960 = vmatpush1.bf16.msra.mxu1 %v2644_v14  ;;  %v2707_v14 = vld [vmem:[#allocation9 + $0x3d0] ss:$8 sps:$4 sm:$0xff]  }
 0x2af   :  { %1961 = vmatprep.subr.bf16.mxu1 %v2649_v16  ;;  %v2712_v16 = vld [vmem:[#allocation9 + $0x3e4] ss:$8 sps:$4 sm:$0xff]  }
 0x2b2   :  { %1962 = vmatpush1.bf16.msra.mxu1 %v2647_v18  ;;  %v2710_v18 = vld [vmem:[#allocation9 + $0x3e0] ss:$8 sps:$4 sm:$0xff]  }
 0x2b3   :  { %1963 = vmatprep.subr.bf16.mxu1 %v2652_v19  ;;  %v2715_v19 = vld [vmem:[#allocation9 + $0x3f4] ss:$8 sps:$4 sm:$0xff]  }
 0x2b6   :  { %1964 = vmatpush1.bf16.msra.mxu1 %v2650_v20  ;;  %v2713_v20 = vld [vmem:[#allocation9 + $0x3f0] ss:$8 sps:$4 sm:$0xff]  }
 0x2b7   :  { %1965 = vmatprep.subr.bf16.mxu1 %v2655_v21  ;;  %v1606_v21 = vmax.f32 %v3121_v3, 0.0  ;;  %v2731_v3 = vld [vmem:[#allocation10 + $0xb8] sm:$0xff]  }
 0x2ba   :  { %1966 = vmatpush1.bf16.msra.mxu1 %v2653_v22  ;;  %v1610_v22 = vpack.c.bf16 %v1606_v21, %v1606_v21 }
 0x2bb   :  { %1967 = vmatprep.subr.bf16.mxu1 %v2658_v23  ;;  %v2728_v23 = vld [vmem:[#allocation10 + $0xf0] sm:$0xff]  }
 0x2bc   :  { %2457 = vmatprep.subr.bf16.mxu0 %v2728_v23 }
 0x2be   :  { %1968 = vmatpush1.bf16.msra.mxu1 %v2656_v26 }
 0x2bf   :  { %1969 = vmatprep.subr.bf16.mxu1 %v2661_v33  ;;  %v2729_v33 = vld [vmem:[#allocation10 + $0xb0] sm:$0xff]  }
 0x2c0   :  { %2458 = vmatpush3.bf16.msra.mxu0 %v2729_v33 }
 0x2c2   :  { %1970 = vmatpush1.bf16.msra.mxu1 %v2659_v34 }
 0x2c3   :  { %1971 = vmatprep.subr.bf16.mxu1 %v2664_v36 }
 0x2c6   :  { %1972 = vmatpush1.bf16.msra.mxu1 %v2662_v37 }
 0x2c7   :  { %1973 = vmatprep.subr.bf16.mxu1 %v2667_v39  ;;  %v2730_v39 = vld [vmem:[#allocation10 + $0xf8] sm:$0xff]  }
 0x2c8   :  { %2459 = vmatprep.subr.bf16.mxu0 %v2730_v39 }
 0x2c9   :  { %2460 = vmatpush3.bf16.msra.mxu0 %v2731_v3 }
 0x2ca   :  { %1974 = vmatpush1.bf16.msra.mxu1 %v2665_v40 }
 0x2cb   :  { %1984 = vmatprep.subr.bf16.mxu1 %v2670_v42 }
 0x2cd   :  { %1976 = vmatmul.mubr.bf16.vlgmr.msra.gmra.mrb[28].mxu1 %v1608_v45 }
 0x2ce   :  { %1985 = vmatpush1.bf16.msra.mxu1 %v2668_v44  ;;  %2016 = vmatprep.mubr.bf16.mxu1 %v1611_v46  ;;  %v2336_v44 = vld [vmem:[%s3175_s8 + $0x11] ss:$4 sm:$0x3] }
 0x2cf   :  { %1986 = vmatprep.subr.bf16.mxu1 %v2673_v30  ;;  %v1616_v45 = vrot.slane %v2336_v44, %v3101_v15  ;;  %v1620_v30 = vrot.slane %v2336_v44, %v3104_v17 }
 0x2d2   :  { %1987 = vmatpush1.bf16.msra.mxu1 %v2671_v47 }
 0x2d3   :  { %1988 = vmatprep.subr.bf16.mxu1 %v2676_v56 }
 0x2d6   :  { %1989 = vmatpush1.bf16.msra.mxu1 %v2674_v48 }
 0x2d7   :  { %1990 = vmatprep.subr.bf16.mxu1 %v2679_v49 }
 0x2da   :  { %1991 = vmatpush1.bf16.msra.mxu1 %v2677_v50 }
 0x2db   :  { %1992 = vmatprep.subr.bf16.mxu1 %v2682_v5 }
 0x2de   :  { %1993 = vmatpush1.bf16.msra.mxu1 %v2680_v51 }
 0x2df   :  { %1994 = vmatprep.subr.bf16.mxu1 %v2685_v52 }
 0x2e2   :  { %1995 = vmatpush1.bf16.msra.mxu1 %v2683_v53 }
 0x2e3   :  { %1996 = vmatprep.subr.bf16.mxu1 %v2688_v54  ;;  %v2334_v54 = vld [vmem:[%s3175_s8 + $0x2] ss:$0 sm:$0xff] }
 0x2e6   :  { %1997 = vmatpush1.bf16.msra.mxu1 %v2686_v55 }
 0x2e7   :  { %1998 = vmatprep.subr.bf16.mxu1 %v2691_v25  ;;  %v2404_v25 = vld [vmem:[%s3175_s8 + $0x19] ss:$0 sm:$0xff] }
 0x2ea   :  { %1999 = vmatpush1.bf16.msra.mxu1 %v2689_v27 }
 0x2eb   :  { %2000 = vmatprep.subr.bf16.mxu1 %v2694_v29 }
 0x2ee   :  { %2001 = vmatpush1.bf16.msra.mxu1 %v2692_v58 }
 0x2ef   :  { %2002 = vmatprep.subr.bf16.mxu1 %v2697_v61 }
 0x2f2   :  { %2003 = vmatpush1.bf16.msra.mxu1 %v2695_v63  ;;  %v2422_v63 = vld [vmem:[%s3175_s8 + $0x12] ss:$0 sm:$0xff] }
 0x2f3   :  { %2004 = vmatprep.subr.bf16.mxu1 %v2700_v2 }
 0x2f6   :  { %2005 = vmatpush1.bf16.msra.mxu1 %v2698_v0 }
 0x2f7   :  { %2006 = vmatprep.subr.bf16.mxu1 %v2703_v6 }
 0x2fa   :  { %2007 = vmatpush1.bf16.msra.mxu1 %v2701_v8 }
 0x2fb   :  { %2008 = vmatprep.subr.bf16.mxu1 %v2706_v10 }
 0x2fe   :  { %2009 = vmatpush1.bf16.msra.mxu1 %v2704_v12 }
 0x2ff   :  { %2010 = vmatprep.subr.bf16.mxu1 %v2709_v13 }
 0x302   :  { %2011 = vmatpush1.bf16.msra.mxu1 %v2707_v14 }
 0x303   :  { %2012 = vmatprep.subr.bf16.mxu1 %v2712_v16 }
 0x306   :  { %2013 = vmatpush1.bf16.msra.mxu1 %v2710_v18 }
 0x307   :  { %2014 = vmatprep.subr.bf16.mxu1 %v2715_v19 }
 0x30a   :  { %2015 = vmatpush1.bf16.msra.mxu1 %v2713_v20 }
 0x30d   :  { %2017 = vmatmul.mubr.bf16.vlgmr.msra.gmra.mrb[28].mxu1 %v1610_v22 }
 0x360   :  { %v2439_v26 = vpop.f32.mrb[24].mxu1 }
 0x361   :  { %v2440_v34 = vpop.f32.mrb[25].mxu1 }
 0x362   :  { %v2441_v36 = vadd.f32 %v2440_v34, %v2439_v26  ;;  %v2442_v37 = vpop.f32.mrb[26].mxu1 }
 0x363   :  { %v2443_v38 = vpop.f32.mrb[27].mxu1 }
 0x364   :  { %v1456_v40 = vadd.f32 %v2441_v36, %v2316_v35 }
 0x366   :  { %v1461_v42 = vmax.f32 %v1456_v40, 0.0 }
 0x368   :  { %v1466_v43 = vmul.f32 %v2333_v41, %v1461_v42 }
 0x36a   :  { %1467 = vadd.xlane.f32.xlu0 %v1466_v43 }
 0x3e0   :  { %v2018_v46 = vpop.f32.mrb[28].mxu1 }
 0x3e1   :  { %v2469_v47 = vadd.f32 %v2018_v46, %v1616_v45  ;;  %v2020_v56 = vpop.f32.mrb[29].mxu1 }
 0x3e2   :  { %v2470_v48 = vadd.f32 %v2020_v56, %v1620_v30  ;;  %v2022_v49 = vpop.f32.mrb[30].mxu1 }
 0x3e3   :  { %v2025_v50 = vmax.f32 %v2469_v47, 0.0  ;;  %v2023_v5 = vpop.f32.mrb[31].mxu1 }
 0x3e4   :  { %v2026_v51 = vmax.f32 %v2470_v48, 0.0 }
 0x3e5   :  { %v2027_v53 = vpack.c.bf16 %v2025_v50, %v2025_v50 }
 0x3e6   :  { %v2028_v52 = vpack.c.bf16 %v2026_v51, %v2026_v51 }
 0x3e8   :  { %2161 = vmatprep.mubr.bf16.mxu0 %v2028_v52 }
 0x3e9   :  { %2162 = vmatmul.mubr.bf16.vlgmr.msra.gmra.mrb[28].mxu0 %v2027_v53 }
 0x3f7   :  { %v1468_v55 = vpop.xlane.xlu0 %1467 }
 0x3f8   :  { %v1473_v15 = vadd.f32 %v2334_v54, %v1468_v55 }
 0x3fa   :  { %2187 = vperm.xlu1 %2490, %v1473_v15  }
 0x479   :  { %v2188_v0 = vpop.permute.xlu1 %2187 }
 0x4bc   :  { %v2461_v17 = vpop.f32.mrb[28].mxu0 }
 0x4bd   :  { %v2462_v27 = vpop.f32.mrb[29].mxu0 }
 0x4be   :  { %v2463_v29 = vadd.f32 %v2462_v27, %v2461_v17  ;;  %v2464_v58 = vpop.f32.mrb[30].mxu0 }
 0x4bf   :  { %v2465_v59 = vpop.f32.mrb[31].mxu0 }
 0x4c0   :  { %v2164_v60 = vadd.f32 %v2463_v29, %v2404_v25 }
 0x4c2   :  { %v2169_v61 = vmax.f32 %v2164_v60, 0.0 }
 0x4c4   :  { %v2174_v62 = vmul.f32 %v2421_v28, %v2169_v61 }
 0x4c6   :  { %2175 = vadd.xlane.f32.xlu0 %v2174_v62 }
 0x553   :  { %v2176_v1 = vpop.xlane.xlu0 %2175 }
 0x554   :  { %v2181_v2 = vadd.f32 %v2422_v63, %v2176_v1 }
 0x556   :  { %2192 = vperm.xlu1 %2490, %v2181_v2  }
 0x5d5   :  { %v2193_v4 = vpop.permute.xlu1 %2192 }
 0x5d6   :  { %v2195_v6 = vsel %vm2184_vm3, %v2188_v0, %v2193_v4 }
 0x5d7   :  { %2197 = vst.msk [vmem:[%s3176_s9] sm:$0xff] %vm2196_vm4, %v2195_v6 }
 0x5d8   :  { %2202 = vsyncpa [#allocation3], 1 }
 0x5d9   :  { %2203 = vsyncpa [#allocation5], 1 }
 0x5da   :  { %2204 = vsyncpa [#allocation8], 1 }
 0x5db   :  { %2205 = vsyncpa [#allocation11], 1 }

</bundles_post_ra>
